<compile_context>
chip_gen: v7x
topology: tpu7x:2x2x1
jax: 0.10.0
libtpu: 0.0.40
codegen_flags: <defaults>
</compile_context>

<pallas_src>
import math

import jax
import jax.numpy as jnp
from jax import lax
from jax.experimental import pallas as pl
from jax.experimental.pallas import tpu as pltpu


_INV_SQRT2 = 1.0 / math.sqrt(2.0)


def _erf_approx(z):
    """Abramowitz & Stegun 7.1.26 erf approximation, |abs err| <= 1.5e-7 (~f32 eps).

    Uses only ops with guaranteed Mosaic lowerings on all TPU generations
    (VPU mul/add/div/abs/select, EUP exp).
    """
    a1, a2, a3, a4, a5 = (0.254829592, -0.284496736, 1.421413741,
                          -1.453152027, 1.061405429)
    p = 0.3275911
    sign = jnp.where(z >= 0.0, 1.0, -1.0).astype(jnp.float32)
    za = jnp.abs(z)
    t = 1.0 / (1.0 + p * za)
    poly = ((((a5 * t + a4) * t + a3) * t + a2) * t + a1) * t
    return sign * (1.0 - poly * jnp.exp(-za * za))


def _conv_gn_gelu(x, w_ref, gamma, beta):
    """One Conv1d(k=3, pad=1, no bias) + GroupNorm(1, Cout) + exact GELU on one sample.

    x:      (L, Cin) f32 value (lives in vregs/VMEM, never goes back to HBM)
    w_ref:  (3, Cin, Cout) ref, tap-major (w_ref[k] == W_pt[:, :, k].T)
    gamma:  (1, Cout) f32
    beta:   (1, Cout) f32
    returns (L, Cout) f32
    """
    L = x.shape[0]
    row = lax.broadcasted_iota(jnp.int32, x.shape, 0)
    # Shifted copies for the 3 conv taps; zero padding at the sequence edges.
    # pltpu.roll only accepts non-negative shifts -> "shift by -1" is shift = L-1.
    x_m = jnp.where(row >= 1, pltpu.roll(x, shift=1, axis=0), 0.0)          # x[l-1]
    x_p = jnp.where(row <= L - 2, pltpu.roll(x, shift=L - 1, axis=0), 0.0)  # x[l+1]

    # Three tap matmuls with f32 accumulation on the MXU (K=8/16 pads to 128 anyway).
    y = (jnp.dot(x_m, w_ref[0], preferred_element_type=jnp.float32)
         + jnp.dot(x, w_ref[1], preferred_element_type=jnp.float32)
         + jnp.dot(x_p, w_ref[2], preferred_element_type=jnp.float32))      # (L, Cout)

    # GroupNorm(num_groups=1): normalize over all (L, Cout) elements of this sample.
    # One-pass stats; clamp the variance against cancellation.
    n = jnp.float32(y.shape[0] * y.shape[1])
    s1 = jnp.sum(y, axis=1, keepdims=True).sum(axis=0, keepdims=True)       # (1, 1)
    s2 = jnp.sum(y * y, axis=1, keepdims=True).sum(axis=0, keepdims=True)   # (1, 1)
    mean = s1 / n
    var = jnp.maximum(s2 / n - mean * mean, 0.0)
    y = (y - mean) * lax.rsqrt(var + 1e-5)
    y = y * gamma + beta

    # Exact GELU (PyTorch nn.GELU default): 0.5 * x * (1 + erf(x / sqrt(2))).
    return 0.5 * y * (1.0 + _erf_approx(y * _INV_SQRT2))


def text_conv_embed(x, params):
    """Full TextConvEmbed forward as one fused Pallas kernel.

    x: (B, L, input_dim) channels-last.  params: list of (w, gamma, beta) per layer,
    with w stored tap-major as (3, Cin, Cout).  Returns (B, L, embed_dim).
    """
    B, L, cin0 = x.shape
    depth = len(params)
    cout = params[-1][0].shape[-1]

    def kernel(x_ref, *refs):
        param_refs, o_ref = refs[:-1], refs[-1]
        # For a bf16 deployment one would keep bf16 operands into the first dot
        # (f32 accumulation via preferred_element_type); this config is f32.
        y = x_ref[...].astype(jnp.float32)
        for i in range(depth):                         # depth is static -> unrolled
            w_ref = param_refs[3 * i]
            gamma = param_refs[3 * i + 1][...].astype(jnp.float32)
            beta = param_refs[3 * i + 2][...].astype(jnp.float32)
            y = _conv_gn_gelu(y, w_ref, gamma, beta)
        o_ref[...] = y.astype(o_ref.dtype)

    in_specs = [pl.BlockSpec((None, L, cin0), lambda b: (b, 0, 0))]   # one sample/step
    flat_params = []
    for (w, gamma, beta) in params:
        in_specs.append(pl.BlockSpec(w.shape, lambda b: (0, 0, 0)))   # full weights
        in_specs.append(pl.BlockSpec(gamma.shape, lambda b: (0, 0)))
        in_specs.append(pl.BlockSpec(beta.shape, lambda b: (0, 0)))
        flat_params += [w, gamma, beta]

    return pl.pallas_call(
        kernel,
        out_shape=jax.ShapeDtypeStruct((B, L, cout), x.dtype),
        grid=(B,),
        in_specs=in_specs,
        out_specs=pl.BlockSpec((None, L, cout), lambda b: (b, 0, 0)),
        compiler_params=pltpu.CompilerParams(
            dimension_semantics=("parallel",),
        ),
    )(x, *flat_params)


def init_text_conv_embed_params(key, input_dim, embed_dim=32, depth=3):
    """Deterministic synthetic params matching TextConvEmbed's shapes.

    Conv weights are stored tap-major as (3, Cin, Cout); GroupNorm uses the PyTorch
    default affine init (gamma=1, beta=0).
    """
    params = []
    for i in range(depth):
        cin = input_dim if i == 0 else embed_dim // 2 ** (depth - i)
        cout = embed_dim // 2 ** (depth - i - 1)
        k = jax.random.fold_in(key, i)
        fan_in = cin * 3
        w = jax.random.normal(k, (3, cin, cout), jnp.float32) / math.sqrt(fan_in)
        gamma = jnp.ones((1, cout), jnp.float32)
        beta = jnp.zeros((1, cout), jnp.float32)
        params.append((w, gamma, beta))
    return params


def _ref_block(x, w, gamma, beta):
    xp = jnp.pad(x, ((0, 0), (1, 1), (0, 0)))
    y = xp[:, :-2] @ w[0] + xp[:, 1:-1] @ w[1] + xp[:, 2:] @ w[2]
    mean = y.mean(axis=(1, 2), keepdims=True)
    var = ((y - mean) ** 2).mean(axis=(1, 2), keepdims=True)
    y_hat = (y - mean) / jnp.sqrt(var + 1e-5)
    return jax.nn.gelu(y_hat * gamma + beta, approximate=False)


def _ref_forward(x, params):
    for (w, gamma, beta) in params:
        x = _ref_block(x, w, gamma, beta)
    return x


if __name__ == "__main__":
    B, L, INPUT_DIM, EMBED_DIM, DEPTH = 2, 16, 8, 32, 3

    key = jax.random.PRNGKey(0)
    kx, kp = jax.random.split(key)
    x = jax.random.normal(kx, (B, L, INPUT_DIM), jnp.float32)
    params = init_text_conv_embed_params(kp, INPUT_DIM, EMBED_DIM, DEPTH)

    out = jax.jit(text_conv_embed)(x, params)
    out = jax.block_until_ready(out)

    ref = _ref_forward(x, params)
    assert out.shape == (B, L, EMBED_DIM), out.shape
    max_err = float(jnp.max(jnp.abs(out - ref)))
    assert jnp.allclose(out, ref, rtol=1e-4, atol=1e-4), max_err

    print("KERNEL_OK")
</pallas_src>

<mosaic_0001>
module attributes {stable_mosaic.version = 11 : i64} {
  func.func @kernel(%arg0: i32, %arg1: memref<1x16x8xf32, #tpu.memory_space<vmem>>, %arg2: memref<3x8x8xf32, #tpu.memory_space<vmem>>, %arg3: memref<1x8xf32, #tpu.memory_space<vmem>>, %arg4: memref<1x8xf32, #tpu.memory_space<vmem>>, %arg5: memref<3x8x16xf32, #tpu.memory_space<vmem>>, %arg6: memref<1x16xf32, #tpu.memory_space<vmem>>, %arg7: memref<1x16xf32, #tpu.memory_space<vmem>>, %arg8: memref<3x16x32xf32, #tpu.memory_space<vmem>>, %arg9: memref<1x32xf32, #tpu.memory_space<vmem>>, %arg10: memref<1x32xf32, #tpu.memory_space<vmem>>, %arg11: memref<1x16x32xf32, #tpu.memory_space<vmem>>) attributes {dimension_semantics = [#tpu.dimension_semantics<parallel>], iteration_bounds = array<i64: 2>, scalar_prefetch = 0 : i64, scratch_operands = 0 : i64, tpu.core_type = #tpu.core_type<tc>, window_params = [{transform_indices = @transform_0, window_bounds = array<i64: 1, 16, 8>}, {pipeline_mode = #tpu.pipeline_mode<synchronous>, transform_indices = @transform_1, window_bounds = array<i64: 3, 8, 8>}, {pipeline_mode = #tpu.pipeline_mode<synchronous>, transform_indices = @transform_2, window_bounds = array<i64: 1, 8>}, {pipeline_mode = #tpu.pipeline_mode<synchronous>, transform_indices = @transform_3, window_bounds = array<i64: 1, 8>}, {pipeline_mode = #tpu.pipeline_mode<synchronous>, transform_indices = @transform_4, window_bounds = array<i64: 3, 8, 16>}, {pipeline_mode = #tpu.pipeline_mode<synchronous>, transform_indices = @transform_5, window_bounds = array<i64: 1, 16>}, {pipeline_mode = #tpu.pipeline_mode<synchronous>, transform_indices = @transform_6, window_bounds = array<i64: 1, 16>}, {pipeline_mode = #tpu.pipeline_mode<synchronous>, transform_indices = @transform_7, window_bounds = array<i64: 3, 16, 32>}, {pipeline_mode = #tpu.pipeline_mode<synchronous>, transform_indices = @transform_8, window_bounds = array<i64: 1, 32>}, {pipeline_mode = #tpu.pipeline_mode<synchronous>, transform_indices = @transform_9, window_bounds = array<i64: 1, 32>}, {transform_indices = @transform_10, window_bounds = array<i64: 1, 16, 32>}]} {
    %c0 = arith.constant 0 : index
    %c0_0 = arith.constant 0 : index
    %c0_1 = arith.constant 0 : index
    %0 = vector.load %arg1[%c0, %c0_0, %c0_1] : memref<1x16x8xf32, #tpu.memory_space<vmem>>, vector<1x16x8xf32>
    %1 = vector.shape_cast %0 : vector<1x16x8xf32> to vector<16x8xf32>
    %c0_2 = arith.constant 0 : index
    %c0_3 = arith.constant 0 : index
    %2 = vector.load %arg3[%c0_2, %c0_3] : memref<1x8xf32, #tpu.memory_space<vmem>>, vector<1x8xf32>
    %c0_4 = arith.constant 0 : index
    %c0_5 = arith.constant 0 : index
    %3 = vector.load %arg4[%c0_4, %c0_5] : memref<1x8xf32, #tpu.memory_space<vmem>>, vector<1x8xf32>
    %4 = tpu.iota {dimensions = array<i32: 0>} : vector<16x8xi32>
    %c1_i32 = arith.constant 1 : i32
    %5 = vector.broadcast %c1_i32 : i32 to vector<16x8xi32>
    %6 = arith.cmpi sge, %4, %5 : vector<16x8xi32>
    %c1_i32_6 = arith.constant 1 : i32
    %7 = tpu.dynamic_rotate %1 by %c1_i32_6 dim 0 : vector<16x8xf32>, i32 -> vector<16x8xf32>
    %cst = arith.constant 0.000000e+00 : f32
    %8 = vector.broadcast %cst : f32 to vector<16x8xf32>
    %9 = arith.select %6, %7, %8 : vector<16x8xi1>, vector<16x8xf32>
    %c14_i32 = arith.constant 14 : i32
    %10 = vector.broadcast %c14_i32 : i32 to vector<16x8xi32>
    %11 = arith.cmpi sle, %4, %10 : vector<16x8xi32>
    %c15_i32 = arith.constant 15 : i32
    %12 = tpu.dynamic_rotate %1 by %c15_i32 dim 0 : vector<16x8xf32>, i32 -> vector<16x8xf32>
    %cst_7 = arith.constant 0.000000e+00 : f32
    %13 = vector.broadcast %cst_7 : f32 to vector<16x8xf32>
    %14 = arith.select %11, %12, %13 : vector<16x8xi1>, vector<16x8xf32>
    %c0_8 = arith.constant 0 : index
    %c0_9 = arith.constant 0 : index
    %c0_10 = arith.constant 0 : index
    %15 = vector.load %arg2[%c0_8, %c0_9, %c0_10] : memref<3x8x8xf32, #tpu.memory_space<vmem>>, vector<1x8x8xf32>
    %16 = vector.shape_cast %15 : vector<1x8x8xf32> to vector<8x8xf32>
    %cst_11 = arith.constant dense<0.000000e+00> : vector<16x8xf32>
    %17 = tpu.matmul %9, %16, %cst_11 {dimension_numbers = #tpu.dot_dimension_numbers<[1], [0], [0], [1], [0, 0, 1, 1], [], []>} : vector<16x8xf32>, vector<8x8xf32>, vector<16x8xf32> -> vector<16x8xf32>
    %c1 = arith.constant 1 : index
    %c0_12 = arith.constant 0 : index
    %c0_13 = arith.constant 0 : index
    %18 = vector.load %arg2[%c1, %c0_12, %c0_13] : memref<3x8x8xf32, #tpu.memory_space<vmem>>, vector<1x8x8xf32>
    %19 = vector.shape_cast %18 : vector<1x8x8xf32> to vector<8x8xf32>
    %cst_14 = arith.constant dense<0.000000e+00> : vector<16x8xf32>
    %20 = tpu.matmul %1, %19, %cst_14 {dimension_numbers = #tpu.dot_dimension_numbers<[1], [0], [0], [1], [0, 0, 1, 1], [], []>} : vector<16x8xf32>, vector<8x8xf32>, vector<16x8xf32> -> vector<16x8xf32>
    %21 = arith.addf %17, %20 : vector<16x8xf32>
    %c2 = arith.constant 2 : index
    %c0_15 = arith.constant 0 : index
    %c0_16 = arith.constant 0 : index
    %22 = vector.load %arg2[%c2, %c0_15, %c0_16] : memref<3x8x8xf32, #tpu.memory_space<vmem>>, vector<1x8x8xf32>
    %23 = vector.shape_cast %22 : vector<1x8x8xf32> to vector<8x8xf32>
    %cst_17 = arith.constant dense<0.000000e+00> : vector<16x8xf32>
    %24 = tpu.matmul %14, %23, %cst_17 {dimension_numbers = #tpu.dot_dimension_numbers<[1], [0], [0], [1], [0, 0, 1, 1], [], []>} : vector<16x8xf32>, vector<8x8xf32>, vector<16x8xf32> -> vector<16x8xf32>
    %25 = arith.addf %21, %24 : vector<16x8xf32>
    %cst_18 = arith.constant dense<0.000000e+00> : vector<16xf32>
    %26 = vector.multi_reduction <add>, %25, %cst_18 [1] : vector<16x8xf32> to vector<16xf32>
    %27 = vector.shape_cast %26 : vector<16xf32> to vector<16x1xf32>
    %cst_19 = arith.constant dense<0.000000e+00> : vector<1xf32>
    %28 = vector.multi_reduction <add>, %27, %cst_19 [0] : vector<16x1xf32> to vector<1xf32>
    %29 = vector.shape_cast %28 : vector<1xf32> to vector<1x1xf32>
    %30 = arith.mulf %25, %25 : vector<16x8xf32>
    %cst_20 = arith.constant dense<0.000000e+00> : vector<16xf32>
    %31 = vector.multi_reduction <add>, %30, %cst_20 [1] : vector<16x8xf32> to vector<16xf32>
    %32 = vector.shape_cast %31 : vector<16xf32> to vector<16x1xf32>
    %cst_21 = arith.constant dense<0.000000e+00> : vector<1xf32>
    %33 = vector.multi_reduction <add>, %32, %cst_21 [0] : vector<16x1xf32> to vector<1xf32>
    %34 = vector.shape_cast %33 : vector<1xf32> to vector<1x1xf32>
    %cst_22 = arith.constant 1.280000e+02 : f32
    %35 = vector.broadcast %cst_22 : f32 to vector<1x1xf32>
    %36 = arith.divf %29, %35 : vector<1x1xf32>
    %cst_23 = arith.constant 1.280000e+02 : f32
    %37 = vector.broadcast %cst_23 : f32 to vector<1x1xf32>
    %38 = arith.divf %34, %37 : vector<1x1xf32>
    %39 = arith.mulf %36, %36 : vector<1x1xf32>
    %40 = arith.subf %38, %39 : vector<1x1xf32>
    %cst_24 = arith.constant 0.000000e+00 : f32
    %41 = vector.broadcast %cst_24 : f32 to vector<1x1xf32>
    %42 = arith.maximumf %40, %41 : vector<1x1xf32>
    %43 = vector.broadcast %36 : vector<1x1xf32> to vector<16x8xf32>
    %44 = arith.subf %25, %43 : vector<16x8xf32>
    %cst_25 = arith.constant 9.99999974E-6 : f32
    %45 = vector.broadcast %cst_25 : f32 to vector<1x1xf32>
    %46 = arith.addf %42, %45 : vector<1x1xf32>
    %47 = math.rsqrt %46 : vector<1x1xf32>
    %48 = vector.broadcast %47 : vector<1x1xf32> to vector<16x8xf32>
    %49 = arith.mulf %44, %48 : vector<16x8xf32>
    %50 = vector.broadcast %2 : vector<1x8xf32> to vector<16x8xf32>
    %51 = arith.mulf %49, %50 : vector<16x8xf32>
    %52 = vector.broadcast %3 : vector<1x8xf32> to vector<16x8xf32>
    %53 = arith.addf %51, %52 : vector<16x8xf32>
    %cst_26 = arith.constant 5.000000e-01 : f32
    %54 = vector.broadcast %cst_26 : f32 to vector<16x8xf32>
    %55 = arith.mulf %54, %53 : vector<16x8xf32>
    %cst_27 = arith.constant 0.707106769 : f32
    %56 = vector.broadcast %cst_27 : f32 to vector<16x8xf32>
    %57 = arith.mulf %53, %56 : vector<16x8xf32>
    %cst_28 = arith.constant 0.000000e+00 : f32
    %58 = vector.broadcast %cst_28 : f32 to vector<16x8xf32>
    %59 = arith.cmpf oge, %57, %58 : vector<16x8xf32>
    %cst_29 = arith.constant 1.000000e+00 : f32
    %cst_30 = arith.constant -1.000000e+00 : f32
    %60 = vector.broadcast %cst_29 : f32 to vector<16x8xf32>
    %61 = vector.broadcast %cst_30 : f32 to vector<16x8xf32>
    %62 = arith.select %59, %60, %61 : vector<16x8xi1>, vector<16x8xf32>
    %63 = math.absf %57 : vector<16x8xf32>
    %cst_31 = arith.constant 0.327591091 : f32
    %64 = vector.broadcast %cst_31 : f32 to vector<16x8xf32>
    %65 = arith.mulf %64, %63 : vector<16x8xf32>
    %cst_32 = arith.constant 1.000000e+00 : f32
    %66 = vector.broadcast %cst_32 : f32 to vector<16x8xf32>
    %67 = arith.addf %66, %65 : vector<16x8xf32>
    %cst_33 = arith.constant 1.000000e+00 : f32
    %68 = vector.broadcast %cst_33 : f32 to vector<16x8xf32>
    %69 = arith.divf %68, %67 : vector<16x8xf32>
    %cst_34 = arith.constant 1.06140542 : f32
    %70 = vector.broadcast %cst_34 : f32 to vector<16x8xf32>
    %71 = arith.mulf %70, %69 : vector<16x8xf32>
    %cst_35 = arith.constant -1.45315206 : f32
    %72 = vector.broadcast %cst_35 : f32 to vector<16x8xf32>
    %73 = arith.addf %71, %72 : vector<16x8xf32>
    %74 = arith.mulf %73, %69 : vector<16x8xf32>
    %cst_36 = arith.constant 1.42141378 : f32
    %75 = vector.broadcast %cst_36 : f32 to vector<16x8xf32>
    %76 = arith.addf %74, %75 : vector<16x8xf32>
    %77 = arith.mulf %76, %69 : vector<16x8xf32>
    %cst_37 = arith.constant -0.284496725 : f32
    %78 = vector.broadcast %cst_37 : f32 to vector<16x8xf32>
    %79 = arith.addf %77, %78 : vector<16x8xf32>
    %80 = arith.mulf %79, %69 : vector<16x8xf32>
    %cst_38 = arith.constant 0.254829586 : f32
    %81 = vector.broadcast %cst_38 : f32 to vector<16x8xf32>
    %82 = arith.addf %80, %81 : vector<16x8xf32>
    %83 = arith.mulf %82, %69 : vector<16x8xf32>
    %cst_39 = arith.constant 0.000000e+00 : f32
    %84 = vector.broadcast %cst_39 : f32 to vector<16x8xf32>
    %85 = arith.subf %84, %63 : vector<16x8xf32>
    %86 = arith.mulf %85, %63 : vector<16x8xf32>
    %87 = math.exp %86 : vector<16x8xf32>
    %88 = arith.mulf %83, %87 : vector<16x8xf32>
    %cst_40 = arith.constant 1.000000e+00 : f32
    %89 = vector.broadcast %cst_40 : f32 to vector<16x8xf32>
    %90 = arith.subf %89, %88 : vector<16x8xf32>
    %91 = arith.mulf %62, %90 : vector<16x8xf32>
    %cst_41 = arith.constant 1.000000e+00 : f32
    %92 = vector.broadcast %cst_41 : f32 to vector<16x8xf32>
    %93 = arith.addf %92, %91 : vector<16x8xf32>
    %94 = arith.mulf %55, %93 : vector<16x8xf32>
    %c0_42 = arith.constant 0 : index
    %c0_43 = arith.constant 0 : index
    %95 = vector.load %arg6[%c0_42, %c0_43] : memref<1x16xf32, #tpu.memory_space<vmem>>, vector<1x16xf32>
    %c0_44 = arith.constant 0 : index
    %c0_45 = arith.constant 0 : index
    %96 = vector.load %arg7[%c0_44, %c0_45] : memref<1x16xf32, #tpu.memory_space<vmem>>, vector<1x16xf32>
    %97 = tpu.iota {dimensions = array<i32: 0>} : vector<16x8xi32>
    %c1_i32_46 = arith.constant 1 : i32
    %98 = vector.broadcast %c1_i32_46 : i32 to vector<16x8xi32>
    %99 = arith.cmpi sge, %97, %98 : vector<16x8xi32>
    %c1_i32_47 = arith.constant 1 : i32
    %100 = tpu.dynamic_rotate %94 by %c1_i32_47 dim 0 : vector<16x8xf32>, i32 -> vector<16x8xf32>
    %cst_48 = arith.constant 0.000000e+00 : f32
    %101 = vector.broadcast %cst_48 : f32 to vector<16x8xf32>
    %102 = arith.select %99, %100, %101 : vector<16x8xi1>, vector<16x8xf32>
    %c14_i32_49 = arith.constant 14 : i32
    %103 = vector.broadcast %c14_i32_49 : i32 to vector<16x8xi32>
    %104 = arith.cmpi sle, %97, %103 : vector<16x8xi32>
    %c15_i32_50 = arith.constant 15 : i32
    %105 = tpu.dynamic_rotate %94 by %c15_i32_50 dim 0 : vector<16x8xf32>, i32 -> vector<16x8xf32>
    %cst_51 = arith.constant 0.000000e+00 : f32
    %106 = vector.broadcast %cst_51 : f32 to vector<16x8xf32>
    %107 = arith.select %104, %105, %106 : vector<16x8xi1>, vector<16x8xf32>
    %c0_52 = arith.constant 0 : index
    %c0_53 = arith.constant 0 : index
    %c0_54 = arith.constant 0 : index
    %108 = vector.load %arg5[%c0_52, %c0_53, %c0_54] : memref<3x8x16xf32, #tpu.memory_space<vmem>>, vector<1x8x16xf32>
    %109 = vector.shape_cast %108 : vector<1x8x16xf32> to vector<8x16xf32>
    %cst_55 = arith.constant dense<0.000000e+00> : vector<16x16xf32>
    %110 = tpu.matmul %102, %109, %cst_55 {dimension_numbers = #tpu.dot_dimension_numbers<[1], [0], [0], [1], [0, 0, 1, 1], [], []>} : vector<16x8xf32>, vector<8x16xf32>, vector<16x16xf32> -> vector<16x16xf32>
    %c1_56 = arith.constant 1 : index
    %c0_57 = arith.constant 0 : index
    %c0_58 = arith.constant 0 : index
    %111 = vector.load %arg5[%c1_56, %c0_57, %c0_58] : memref<3x8x16xf32, #tpu.memory_space<vmem>>, vector<1x8x16xf32>
    %112 = vector.shape_cast %111 : vector<1x8x16xf32> to vector<8x16xf32>
    %cst_59 = arith.constant dense<0.000000e+00> : vector<16x16xf32>
    %113 = tpu.matmul %94, %112, %cst_59 {dimension_numbers = #tpu.dot_dimension_numbers<[1], [0], [0], [1], [0, 0, 1, 1], [], []>} : vector<16x8xf32>, vector<8x16xf32>, vector<16x16xf32> -> vector<16x16xf32>
    %114 = arith.addf %110, %113 : vector<16x16xf32>
    %c2_60 = arith.constant 2 : index
    %c0_61 = arith.constant 0 : index
    %c0_62 = arith.constant 0 : index
    %115 = vector.load %arg5[%c2_60, %c0_61, %c0_62] : memref<3x8x16xf32, #tpu.memory_space<vmem>>, vector<1x8x16xf32>
    %116 = vector.shape_cast %115 : vector<1x8x16xf32> to vector<8x16xf32>
    %cst_63 = arith.constant dense<0.000000e+00> : vector<16x16xf32>
    %117 = tpu.matmul %107, %116, %cst_63 {dimension_numbers = #tpu.dot_dimension_numbers<[1], [0], [0], [1], [0, 0, 1, 1], [], []>} : vector<16x8xf32>, vector<8x16xf32>, vector<16x16xf32> -> vector<16x16xf32>
    %118 = arith.addf %114, %117 : vector<16x16xf32>
    %cst_64 = arith.constant dense<0.000000e+00> : vector<16xf32>
    %119 = vector.multi_reduction <add>, %118, %cst_64 [1] : vector<16x16xf32> to vector<16xf32>
    %120 = vector.shape_cast %119 : vector<16xf32> to vector<16x1xf32>
    %cst_65 = arith.constant dense<0.000000e+00> : vector<1xf32>
    %121 = vector.multi_reduction <add>, %120, %cst_65 [0] : vector<16x1xf32> to vector<1xf32>
    %122 = vector.shape_cast %121 : vector<1xf32> to vector<1x1xf32>
    %123 = arith.mulf %118, %118 : vector<16x16xf32>
    %cst_66 = arith.constant dense<0.000000e+00> : vector<16xf32>
    %124 = vector.multi_reduction <add>, %123, %cst_66 [1] : vector<16x16xf32> to vector<16xf32>
    %125 = vector.shape_cast %124 : vector<16xf32> to vector<16x1xf32>
    %cst_67 = arith.constant dense<0.000000e+00> : vector<1xf32>
    %126 = vector.multi_reduction <add>, %125, %cst_67 [0] : vector<16x1xf32> to vector<1xf32>
    %127 = vector.shape_cast %126 : vector<1xf32> to vector<1x1xf32>
    %cst_68 = arith.constant 2.560000e+02 : f32
    %128 = vector.broadcast %cst_68 : f32 to vector<1x1xf32>
    %129 = arith.divf %122, %128 : vector<1x1xf32>
    %cst_69 = arith.constant 2.560000e+02 : f32
    %130 = vector.broadcast %cst_69 : f32 to vector<1x1xf32>
    %131 = arith.divf %127, %130 : vector<1x1xf32>
    %132 = arith.mulf %129, %129 : vector<1x1xf32>
    %133 = arith.subf %131, %132 : vector<1x1xf32>
    %cst_70 = arith.constant 0.000000e+00 : f32
    %134 = vector.broadcast %cst_70 : f32 to vector<1x1xf32>
    %135 = arith.maximumf %133, %134 : vector<1x1xf32>
    %136 = vector.broadcast %129 : vector<1x1xf32> to vector<16x16xf32>
    %137 = arith.subf %118, %136 : vector<16x16xf32>
    %cst_71 = arith.constant 9.99999974E-6 : f32
    %138 = vector.broadcast %cst_71 : f32 to vector<1x1xf32>
    %139 = arith.addf %135, %138 : vector<1x1xf32>
    %140 = math.rsqrt %139 : vector<1x1xf32>
    %141 = vector.broadcast %140 : vector<1x1xf32> to vector<16x16xf32>
    %142 = arith.mulf %137, %141 : vector<16x16xf32>
    %143 = vector.broadcast %95 : vector<1x16xf32> to vector<16x16xf32>
    %144 = arith.mulf %142, %143 : vector<16x16xf32>
    %145 = vector.broadcast %96 : vector<1x16xf32> to vector<16x16xf32>
    %146 = arith.addf %144, %145 : vector<16x16xf32>
    %cst_72 = arith.constant 5.000000e-01 : f32
    %147 = vector.broadcast %cst_72 : f32 to vector<16x16xf32>
    %148 = arith.mulf %147, %146 : vector<16x16xf32>
    %cst_73 = arith.constant 0.707106769 : f32
    %149 = vector.broadcast %cst_73 : f32 to vector<16x16xf32>
    %150 = arith.mulf %146, %149 : vector<16x16xf32>
    %cst_74 = arith.constant 0.000000e+00 : f32
    %151 = vector.broadcast %cst_74 : f32 to vector<16x16xf32>
    %152 = arith.cmpf oge, %150, %151 : vector<16x16xf32>
    %cst_75 = arith.constant 1.000000e+00 : f32
    %cst_76 = arith.constant -1.000000e+00 : f32
    %153 = vector.broadcast %cst_75 : f32 to vector<16x16xf32>
    %154 = vector.broadcast %cst_76 : f32 to vector<16x16xf32>
    %155 = arith.select %152, %153, %154 : vector<16x16xi1>, vector<16x16xf32>
    %156 = math.absf %150 : vector<16x16xf32>
    %cst_77 = arith.constant 0.327591091 : f32
    %157 = vector.broadcast %cst_77 : f32 to vector<16x16xf32>
    %158 = arith.mulf %157, %156 : vector<16x16xf32>
    %cst_78 = arith.constant 1.000000e+00 : f32
    %159 = vector.broadcast %cst_78 : f32 to vector<16x16xf32>
    %160 = arith.addf %159, %158 : vector<16x16xf32>
    %cst_79 = arith.constant 1.000000e+00 : f32
    %161 = vector.broadcast %cst_79 : f32 to vector<16x16xf32>
    %162 = arith.divf %161, %160 : vector<16x16xf32>
    %cst_80 = arith.constant 1.06140542 : f32
    %163 = vector.broadcast %cst_80 : f32 to vector<16x16xf32>
    %164 = arith.mulf %163, %162 : vector<16x16xf32>
    %cst_81 = arith.constant -1.45315206 : f32
    %165 = vector.broadcast %cst_81 : f32 to vector<16x16xf32>
    %166 = arith.addf %164, %165 : vector<16x16xf32>
    %167 = arith.mulf %166, %162 : vector<16x16xf32>
    %cst_82 = arith.constant 1.42141378 : f32
    %168 = vector.broadcast %cst_82 : f32 to vector<16x16xf32>
    %169 = arith.addf %167, %168 : vector<16x16xf32>
    %170 = arith.mulf %169, %162 : vector<16x16xf32>
    %cst_83 = arith.constant -0.284496725 : f32
    %171 = vector.broadcast %cst_83 : f32 to vector<16x16xf32>
    %172 = arith.addf %170, %171 : vector<16x16xf32>
    %173 = arith.mulf %172, %162 : vector<16x16xf32>
    %cst_84 = arith.constant 0.254829586 : f32
    %174 = vector.broadcast %cst_84 : f32 to vector<16x16xf32>
    %175 = arith.addf %173, %174 : vector<16x16xf32>
    %176 = arith.mulf %175, %162 : vector<16x16xf32>
    %cst_85 = arith.constant 0.000000e+00 : f32
    %177 = vector.broadcast %cst_85 : f32 to vector<16x16xf32>
    %178 = arith.subf %177, %156 : vector<16x16xf32>
    %179 = arith.mulf %178, %156 : vector<16x16xf32>
    %180 = math.exp %179 : vector<16x16xf32>
    %181 = arith.mulf %176, %180 : vector<16x16xf32>
    %cst_86 = arith.constant 1.000000e+00 : f32
    %182 = vector.broadcast %cst_86 : f32 to vector<16x16xf32>
    %183 = arith.subf %182, %181 : vector<16x16xf32>
    %184 = arith.mulf %155, %183 : vector<16x16xf32>
    %cst_87 = arith.constant 1.000000e+00 : f32
    %185 = vector.broadcast %cst_87 : f32 to vector<16x16xf32>
    %186 = arith.addf %185, %184 : vector<16x16xf32>
    %187 = arith.mulf %148, %186 : vector<16x16xf32>
    %c0_88 = arith.constant 0 : index
    %c0_89 = arith.constant 0 : index
    %188 = vector.load %arg9[%c0_88, %c0_89] : memref<1x32xf32, #tpu.memory_space<vmem>>, vector<1x32xf32>
    %c0_90 = arith.constant 0 : index
    %c0_91 = arith.constant 0 : index
    %189 = vector.load %arg10[%c0_90, %c0_91] : memref<1x32xf32, #tpu.memory_space<vmem>>, vector<1x32xf32>
    %190 = tpu.iota {dimensions = array<i32: 0>} : vector<16x16xi32>
    %c1_i32_92 = arith.constant 1 : i32
    %191 = vector.broadcast %c1_i32_92 : i32 to vector<16x16xi32>
    %192 = arith.cmpi sge, %190, %191 : vector<16x16xi32>
    %c1_i32_93 = arith.constant 1 : i32
    %193 = tpu.dynamic_rotate %187 by %c1_i32_93 dim 0 : vector<16x16xf32>, i32 -> vector<16x16xf32>
    %cst_94 = arith.constant 0.000000e+00 : f32
    %194 = vector.broadcast %cst_94 : f32 to vector<16x16xf32>
    %195 = arith.select %192, %193, %194 : vector<16x16xi1>, vector<16x16xf32>
    %c14_i32_95 = arith.constant 14 : i32
    %196 = vector.broadcast %c14_i32_95 : i32 to vector<16x16xi32>
    %197 = arith.cmpi sle, %190, %196 : vector<16x16xi32>
    %c15_i32_96 = arith.constant 15 : i32
    %198 = tpu.dynamic_rotate %187 by %c15_i32_96 dim 0 : vector<16x16xf32>, i32 -> vector<16x16xf32>
    %cst_97 = arith.constant 0.000000e+00 : f32
    %199 = vector.broadcast %cst_97 : f32 to vector<16x16xf32>
    %200 = arith.select %197, %198, %199 : vector<16x16xi1>, vector<16x16xf32>
    %c0_98 = arith.constant 0 : index
    %c0_99 = arith.constant 0 : index
    %c0_100 = arith.constant 0 : index
    %201 = vector.load %arg8[%c0_98, %c0_99, %c0_100] : memref<3x16x32xf32, #tpu.memory_space<vmem>>, vector<1x16x32xf32>
    %202 = vector.shape_cast %201 : vector<1x16x32xf32> to vector<16x32xf32>
    %cst_101 = arith.constant dense<0.000000e+00> : vector<16x32xf32>
    %203 = tpu.matmul %195, %202, %cst_101 {dimension_numbers = #tpu.dot_dimension_numbers<[1], [0], [0], [1], [0, 0, 1, 1], [], []>} : vector<16x16xf32>, vector<16x32xf32>, vector<16x32xf32> -> vector<16x32xf32>
    %c1_102 = arith.constant 1 : index
    %c0_103 = arith.constant 0 : index
    %c0_104 = arith.constant 0 : index
    %204 = vector.load %arg8[%c1_102, %c0_103, %c0_104] : memref<3x16x32xf32, #tpu.memory_space<vmem>>, vector<1x16x32xf32>
    %205 = vector.shape_cast %204 : vector<1x16x32xf32> to vector<16x32xf32>
    %cst_105 = arith.constant dense<0.000000e+00> : vector<16x32xf32>
    %206 = tpu.matmul %187, %205, %cst_105 {dimension_numbers = #tpu.dot_dimension_numbers<[1], [0], [0], [1], [0, 0, 1, 1], [], []>} : vector<16x16xf32>, vector<16x32xf32>, vector<16x32xf32> -> vector<16x32xf32>
    %207 = arith.addf %203, %206 : vector<16x32xf32>
    %c2_106 = arith.constant 2 : index
    %c0_107 = arith.constant 0 : index
    %c0_108 = arith.constant 0 : index
    %208 = vector.load %arg8[%c2_106, %c0_107, %c0_108] : memref<3x16x32xf32, #tpu.memory_space<vmem>>, vector<1x16x32xf32>
    %209 = vector.shape_cast %208 : vector<1x16x32xf32> to vector<16x32xf32>
    %cst_109 = arith.constant dense<0.000000e+00> : vector<16x32xf32>
    %210 = tpu.matmul %200, %209, %cst_109 {dimension_numbers = #tpu.dot_dimension_numbers<[1], [0], [0], [1], [0, 0, 1, 1], [], []>} : vector<16x16xf32>, vector<16x32xf32>, vector<16x32xf32> -> vector<16x32xf32>
    %211 = arith.addf %207, %210 : vector<16x32xf32>
    %cst_110 = arith.constant dense<0.000000e+00> : vector<16xf32>
    %212 = vector.multi_reduction <add>, %211, %cst_110 [1] : vector<16x32xf32> to vector<16xf32>
    %213 = vector.shape_cast %212 : vector<16xf32> to vector<16x1xf32>
    %cst_111 = arith.constant dense<0.000000e+00> : vector<1xf32>
    %214 = vector.multi_reduction <add>, %213, %cst_111 [0] : vector<16x1xf32> to vector<1xf32>
    %215 = vector.shape_cast %214 : vector<1xf32> to vector<1x1xf32>
    %216 = arith.mulf %211, %211 : vector<16x32xf32>
    %cst_112 = arith.constant dense<0.000000e+00> : vector<16xf32>
    %217 = vector.multi_reduction <add>, %216, %cst_112 [1] : vector<16x32xf32> to vector<16xf32>
    %218 = vector.shape_cast %217 : vector<16xf32> to vector<16x1xf32>
    %cst_113 = arith.constant dense<0.000000e+00> : vector<1xf32>
    %219 = vector.multi_reduction <add>, %218, %cst_113 [0] : vector<16x1xf32> to vector<1xf32>
    %220 = vector.shape_cast %219 : vector<1xf32> to vector<1x1xf32>
    %cst_114 = arith.constant 5.120000e+02 : f32
    %221 = vector.broadcast %cst_114 : f32 to vector<1x1xf32>
    %222 = arith.divf %215, %221 : vector<1x1xf32>
    %cst_115 = arith.constant 5.120000e+02 : f32
    %223 = vector.broadcast %cst_115 : f32 to vector<1x1xf32>
    %224 = arith.divf %220, %223 : vector<1x1xf32>
    %225 = arith.mulf %222, %222 : vector<1x1xf32>
    %226 = arith.subf %224, %225 : vector<1x1xf32>
    %cst_116 = arith.constant 0.000000e+00 : f32
    %227 = vector.broadcast %cst_116 : f32 to vector<1x1xf32>
    %228 = arith.maximumf %226, %227 : vector<1x1xf32>
    %229 = vector.broadcast %222 : vector<1x1xf32> to vector<16x32xf32>
    %230 = arith.subf %211, %229 : vector<16x32xf32>
    %cst_117 = arith.constant 9.99999974E-6 : f32
    %231 = vector.broadcast %cst_117 : f32 to vector<1x1xf32>
    %232 = arith.addf %228, %231 : vector<1x1xf32>
    %233 = math.rsqrt %232 : vector<1x1xf32>
    %234 = vector.broadcast %233 : vector<1x1xf32> to vector<16x32xf32>
    %235 = arith.mulf %230, %234 : vector<16x32xf32>
    %236 = vector.broadcast %188 : vector<1x32xf32> to vector<16x32xf32>
    %237 = arith.mulf %235, %236 : vector<16x32xf32>
    %238 = vector.broadcast %189 : vector<1x32xf32> to vector<16x32xf32>
    %239 = arith.addf %237, %238 : vector<16x32xf32>
    %cst_118 = arith.constant 5.000000e-01 : f32
    %240 = vector.broadcast %cst_118 : f32 to vector<16x32xf32>
    %241 = arith.mulf %240, %239 : vector<16x32xf32>
    %cst_119 = arith.constant 0.707106769 : f32
    %242 = vector.broadcast %cst_119 : f32 to vector<16x32xf32>
    %243 = arith.mulf %239, %242 : vector<16x32xf32>
    %cst_120 = arith.constant 0.000000e+00 : f32
    %244 = vector.broadcast %cst_120 : f32 to vector<16x32xf32>
    %245 = arith.cmpf oge, %243, %244 : vector<16x32xf32>
    %cst_121 = arith.constant 1.000000e+00 : f32
    %cst_122 = arith.constant -1.000000e+00 : f32
    %246 = vector.broadcast %cst_121 : f32 to vector<16x32xf32>
    %247 = vector.broadcast %cst_122 : f32 to vector<16x32xf32>
    %248 = arith.select %245, %246, %247 : vector<16x32xi1>, vector<16x32xf32>
    %249 = math.absf %243 : vector<16x32xf32>
    %cst_123 = arith.constant 0.327591091 : f32
    %250 = vector.broadcast %cst_123 : f32 to vector<16x32xf32>
    %251 = arith.mulf %250, %249 : vector<16x32xf32>
    %cst_124 = arith.constant 1.000000e+00 : f32
    %252 = vector.broadcast %cst_124 : f32 to vector<16x32xf32>
    %253 = arith.addf %252, %251 : vector<16x32xf32>
    %cst_125 = arith.constant 1.000000e+00 : f32
    %254 = vector.broadcast %cst_125 : f32 to vector<16x32xf32>
    %255 = arith.divf %254, %253 : vector<16x32xf32>
    %cst_126 = arith.constant 1.06140542 : f32
    %256 = vector.broadcast %cst_126 : f32 to vector<16x32xf32>
    %257 = arith.mulf %256, %255 : vector<16x32xf32>
    %cst_127 = arith.constant -1.45315206 : f32
    %258 = vector.broadcast %cst_127 : f32 to vector<16x32xf32>
    %259 = arith.addf %257, %258 : vector<16x32xf32>
    %260 = arith.mulf %259, %255 : vector<16x32xf32>
    %cst_128 = arith.constant 1.42141378 : f32
    %261 = vector.broadcast %cst_128 : f32 to vector<16x32xf32>
    %262 = arith.addf %260, %261 : vector<16x32xf32>
    %263 = arith.mulf %262, %255 : vector<16x32xf32>
    %cst_129 = arith.constant -0.284496725 : f32
    %264 = vector.broadcast %cst_129 : f32 to vector<16x32xf32>
    %265 = arith.addf %263, %264 : vector<16x32xf32>
    %266 = arith.mulf %265, %255 : vector<16x32xf32>
    %cst_130 = arith.constant 0.254829586 : f32
    %267 = vector.broadcast %cst_130 : f32 to vector<16x32xf32>
    %268 = arith.addf %266, %267 : vector<16x32xf32>
    %269 = arith.mulf %268, %255 : vector<16x32xf32>
    %cst_131 = arith.constant 0.000000e+00 : f32
    %270 = vector.broadcast %cst_131 : f32 to vector<16x32xf32>
    %271 = arith.subf %270, %249 : vector<16x32xf32>
    %272 = arith.mulf %271, %249 : vector<16x32xf32>
    %273 = math.exp %272 : vector<16x32xf32>
    %274 = arith.mulf %269, %273 : vector<16x32xf32>
    %cst_132 = arith.constant 1.000000e+00 : f32
    %275 = vector.broadcast %cst_132 : f32 to vector<16x32xf32>
    %276 = arith.subf %275, %274 : vector<16x32xf32>
    %277 = arith.mulf %248, %276 : vector<16x32xf32>
    %cst_133 = arith.constant 1.000000e+00 : f32
    %278 = vector.broadcast %cst_133 : f32 to vector<16x32xf32>
    %279 = arith.addf %278, %277 : vector<16x32xf32>
    %280 = arith.mulf %241, %279 : vector<16x32xf32>
    %c0_134 = arith.constant 0 : index
    %c0_135 = arith.constant 0 : index
    %c0_136 = arith.constant 0 : index
    %281 = vector.load %arg11[%c0_134, %c0_135, %c0_136] : memref<1x16x32xf32, #tpu.memory_space<vmem>>, vector<1x16x32xf32>
    %282 = vector.shape_cast %281 : vector<1x16x32xf32> to vector<16x32xf32>
    %283 = vector.shape_cast %280 : vector<16x32xf32> to vector<1x16x32xf32>
    tpu.vector_store %arg11[%c0_134, %c0_135, %c0_136], %283 {strides = array<i32>} : memref<1x16x32xf32, #tpu.memory_space<vmem>>, vector<1x16x32xf32>,
    return
  }
  func.func @transform_0(%arg0: i32) -> (i32, i32, i32) {
    %c0_i32 = arith.constant 0 : i32
    %c0_i32_0 = arith.constant 0 : i32
    %c0_i32_1 = arith.constant 0 : i32
    return %arg0, %c0_i32, %c0_i32_0 : i32, i32, i32
  }
  func.func @transform_1(%arg0: i32) -> (i32, i32, i32) {
    %c0_i32 = arith.constant 0 : i32
    %c0_i32_0 = arith.constant 0 : i32
    %c0_i32_1 = arith.constant 0 : i32
    %c0_i32_2 = arith.constant 0 : i32
    return %c0_i32, %c0_i32_0, %c0_i32_1 : i32, i32, i32
  }
  func.func @transform_2(%arg0: i32) -> (i32, i32) {
    %c0_i32 = arith.constant 0 : i32
    %c0_i32_0 = arith.constant 0 : i32
    %c0_i32_1 = arith.constant 0 : i32
    return %c0_i32, %c0_i32_0 : i32, i32
  }
  func.func @transform_3(%arg0: i32) -> (i32, i32) {
    %c0_i32 = arith.constant 0 : i32
    %c0_i32_0 = arith.constant 0 : i32
    %c0_i32_1 = arith.constant 0 : i32
    return %c0_i32, %c0_i32_0 : i32, i32
  }
  func.func @transform_4(%arg0: i32) -> (i32, i32, i32) {
    %c0_i32 = arith.constant 0 : i32
    %c0_i32_0 = arith.constant 0 : i32
    %c0_i32_1 = arith.constant 0 : i32
    %c0_i32_2 = arith.constant 0 : i32
    return %c0_i32, %c0_i32_0, %c0_i32_1 : i32, i32, i32
  }
  func.func @transform_5(%arg0: i32) -> (i32, i32) {
    %c0_i32 = arith.constant 0 : i32
    %c0_i32_0 = arith.constant 0 : i32
    %c0_i32_1 = arith.constant 0 : i32
    return %c0_i32, %c0_i32_0 : i32, i32
  }
  func.func @transform_6(%arg0: i32) -> (i32, i32) {
    %c0_i32 = arith.constant 0 : i32
    %c0_i32_0 = arith.constant 0 : i32
    %c0_i32_1 = arith.constant 0 : i32
    return %c0_i32, %c0_i32_0 : i32, i32
  }
  func.func @transform_7(%arg0: i32) -> (i32, i32, i32) {
    %c0_i32 = arith.constant 0 : i32
    %c0_i32_0 = arith.constant 0 : i32
    %c0_i32_1 = arith.constant 0 : i32
    %c0_i32_2 = arith.constant 0 : i32
    return %c0_i32, %c0_i32_0, %c0_i32_1 : i32, i32, i32
  }
  func.func @transform_8(%arg0: i32) -> (i32, i32) {
    %c0_i32 = arith.constant 0 : i32
    %c0_i32_0 = arith.constant 0 : i32
    %c0_i32_1 = arith.constant 0 : i32
    return %c0_i32, %c0_i32_0 : i32, i32
  }
  func.func @transform_9(%arg0: i32) -> (i32, i32) {
    %c0_i32 = arith.constant 0 : i32
    %c0_i32_0 = arith.constant 0 : i32
    %c0_i32_1 = arith.constant 0 : i32
    return %c0_i32, %c0_i32_0 : i32, i32
  }
  func.func @transform_10(%arg0: i32) -> (i32, i32, i32) {
    %c0_i32 = arith.constant 0 : i32
    %c0_i32_0 = arith.constant 0 : i32
    %c0_i32_1 = arith.constant 0 : i32
    return %arg0, %c0_i32, %c0_i32_0 : i32, i32, i32
  }
}

</mosaic_0001>

<bundles_post_ra>
// kernel: text_conv_embed.1
= control target key start
LH: loop header
LB: loop body
LE: loop exit
PB: predicated region body
PF: predicated region fallthrough
CT: control target
= control target key end

     0   :  { %s2456_s0 = inlined_call_operand.vmem [shape: f32[2,16,8], index: 0, kind: input, shape index: {}]   ;;  %s2457_s1 = inlined_call_operand.vmem [shape: f32[3,8,8], index: 1, kind: input, shape index: {}]   ;;  %s2458_s2 = inlined_call_operand.vmem [shape: f32[1,8], index: 2, kind: input, shape index: {}]   ;;  %s2459_s3 = inlined_call_operand.vmem [shape: f32[1,8], index: 3, kind: input, shape index: {}]   ;;  %s2460_s4 = inlined_call_operand.hbm [shape: f32[3,8,16], index: 4, kind: input, shape index: {}]   ;;  %s2461_s5 = inlined_call_operand.hbm [shape: f32[1,16], index: 5, kind: input, shape index: {}]   ;;  %s2462_s6 = inlined_call_operand.hbm [shape: f32[1,16], index: 6, kind: input, shape index: {}]   ;;  %s2463_s7 = inlined_call_operand.vmem [shape: f32[3,16,32], index: 7, kind: input, shape index: {}]   ;;  %s2464_s8 = inlined_call_operand.vmem [shape: f32[1,32], index: 8, kind: input, shape index: {}]   ;;  %s2465_s9 = inlined_call_operand.vmem [shape: f32[1,32], index: 9, kind: input, shape index: {}]   ;;  %s2466_s10 = inlined_call_operand.hbm [shape: f32[2,16,32], index: 10, kind: output, shape index: {}]  }
   0x1   :  { %2474 = sst [smem:[#allocation16_spill]] %s2461_s5 }
   0x2   :  { %15 = vsyncpa [#allocation3], 0 }
   0x3   :  { %16 = vsyncpa [#allocation6], 0 }
   0x4   :  { %17 = vsyncpa [#allocation4], 0 }
   0x5   :  { %19 = vsyncpa [#allocation4 + $0x1], 0  ;;  %s2126_s13 = smov 0   ;;  %s2128_s14 = smov 0  }
   0x6   :  { %s2130_s15 = smov 0   ;;  %s2132_s16 = smov 0  }
   0x7 LB: > { %2475 = sst [smem:[#allocation12_spill]] %s2056_s15  ;;  %s2147_s17 = sadd.s32 4294967295, %s2060_s16   ;;  %s2060_s16 = sphi %s2132_s16, %s2493_s16   ;;  %s2056_s15 = sphi %s2130_s15, %s2495_s15   ;;  %s2052_s14 = sphi %s2128_s14, %s2497_s14   ;;  %s2048_s13 = sphi %s2126_s13, %s2496_s13  }
   0x8   : > { %s1646_s18 = sadd.s32 4294967294, %s2060_s16   ;;  %s2151_s19 = sadd.s32 1, %s2060_s16  }
   0x9   : > { %2476 = sst [smem:[#allocation13_spill]] %s2151_s19  ;;  %s247_s20 = sadd.s32 1, %s2056_s15 }
   0xa   : > { %s244_s21 = ssub.s32 %s2060_s16, %s2151_s19  ;;  %p257_p0 = scmp.ne.s32.totalorder %s2056_s15, %s2052_s14 }
   0xb   : > { %p245_p1 = scmp.eq.s32.totalorder %s244_s21, 0  ;;  %p258_p2 = scmp.eq.s32.totalorder %s2147_s17, 1 }
   0xc   : > { %p263_p3 = scmp.ne.s32.totalorder %s2052_s14, %s2048_s13  ;;  %p264_p4 = scmp.eq.s32.totalorder %s1646_s18, 1 }
   0xd   : > { %s2162_s22 = scalar_select %p245_p1, %s2056_s15, %s247_s20  }
   0xe   : > { %p2164_p5 = por %p258_p2, %p257_p0  ;;  %p2168_p6 = por %p264_p4, %p263_p3 }
   0xf   : > { %2477 = sst [smem:[#allocation14_spill]] %s2162_s22  ;;  %p1647_p7 = scmp.ge.s32.totalorder %s2060_s16, 1 }
  0x10   : > { %s2478_s23 = scalar_select %p2164_p5, 1, 0 }
  0x11   : > { %s2479_s24 = scalar_select %p2168_p6, 1, 0 }
  0x12   : > { %p271_p8 = scmp.lt.s32.totalorder %s2060_s16, 3  ;;  %p2468_p9 = scmp.eq.s32.totalorder %s2147_s17, 0 }
  0x13   : > { %2480 = sst [smem:[#allocation15_spill]] %s2479_s24  ;;  %s2062_s26 = smov [#allocation5]  }
  0x14   : > { %p2175_p10 = pnand %p1647_p7, %p271_p8  ;;  %s306_s27 = sshll.u32 %s2062_s26, 4  ;;  %s307_s27 = int_to_ptr.vmem [resolvable:$true] %s306_s27 }
  0x15   : > { %s2063_s28 = smov [#allocation2]   ;;  %s2064_s11 = smov [#allocation7]  }
  0x16   : > { %s2481_s25 = scalar_select %p2175_p10, 1, 0 }
  0x17   : > { %p1815_p11 = pneg %p2175_p10  ;;  %s292_s29 = sshll.u32 %s2063_s28, 4  ;;  %s2187_s29 = int_to_ptr.vmem [resolvable:$true] %s292_s29 }
  0x18   : > { %s2189_s12 = sshll.u32 %s2064_s11, 4  ;;  %s2483_s5 = sld [smem:[#allocation16_spill]]  ;;  %s318_s12 = int_to_ptr.vmem [resolvable:$true] %s2189_s12 }
  0x19   : > { %p2183_p12 = pnand %p2468_p9, %p1815_p11 }
  0x1b   : > { %p2199_p0 = pneg %p2183_p12 }
  0x1e   : > { %s1906_s21 = scalar_lea.hbm %s2483_s5, 16 }
  0x1f   : > { %p1907_p13 = scmp.ne.s32.totalorder %s2483_s5, %s1906_s21  ;;  %p1913_p3 = scmp.lt.u32.totalorder %s1906_s21, %s2483_s5 }
  0x21   : > { %p1909_p1 = pnand %p2199_p0, %p1907_p13 }
  0x23   : > { %p1910_p2 = pneg %p1909_p1 }
  0x25   : > { %p1915_p4 = pnand %p1913_p3, %p1910_p2 }
  0x27   : > { %1918 = shalt.err (!%p1915_p4)
}
  0x28   : > { %s1919_s18 = scalar_lea.vmem %s307_s27, 16  ;;  %s1926_s22 = scalar_lea.vmem %s307_s27, 32 }
  0x29   : > { %p1920_p7 = scmp.ne.s32.totalorder %s307_s27, %s1919_s18  ;;  %p1927_p9 = scmp.lt.s32.totalorder %s307_s27, %s307_s27 }
  0x2a   : > { %p1928_p6 = scmp.lt.s32.totalorder %s1926_s22, %s1919_s18 }
  0x2b   : > { %p1922_p8 = pnand %p1920_p7, %p2199_p0 }
  0x2c   : > { %p1929_p5 = por %p1928_p6, %p1927_p9 }
  0x2d   : > { %p1923_p11 = pneg %p1922_p8 }
  0x2f   : > { %p1930_p10 = pnand %p1929_p5, %p1923_p11 }
  0x31   : > { %1933 = shalt.err (!%p1930_p10)
}
  0x32   : > { %1821 = dma.hbm_to_vmem [thread:$0]  (!%p2183_p12), %s2483_s5, 16, %s307_s27, [#allocation6]  }
  0x33   : > { %s1934_s11 = scalar_lea.hbm %s2460_s4, 384 }
  0x34   : > { %p1935_p13 = scmp.ne.s32.totalorder %s2460_s4, %s1934_s11  ;;  %p1941_p5 = scmp.lt.u32.totalorder %s1934_s11, %s2460_s4 }
  0x36   : > { %p1937_p1 = pnand %p1935_p13, %p2199_p0 }
  0x38   : > { %p1938_p6 = pneg %p1937_p1 }
  0x3a   : > { %p1943_p9 = pnand %p1941_p5, %p1938_p6 }
  0x3c   : > { %1946 = shalt.err (!%p1943_p9)
}
  0x3d   : > { %s1947_s27 = scalar_lea.vmem %s2187_s29, 384  ;;  %p1955_p4 = scmp.lt.s32.totalorder %s2187_s29, %s2187_s29 }
  0x3e   : > { %p1948_p10 = scmp.ne.s32.totalorder %s2187_s29, %s1947_s27  ;;  %p1956_p7 = scmp.lt.s32.totalorder %s1947_s27, %s1947_s27 }
  0x40   : > { %p1950_p2 = pnand %p1948_p10, %p2199_p0  ;;  %p1957_p8 = por %p1956_p7, %p1955_p4 }
  0x42   : > { %p1951_p3 = pneg %p1950_p2 }
  0x44   : > { %p1958_p11 = pnand %p1957_p8, %p1951_p3 }
  0x46   : > { %1961 = shalt.err (!%p1958_p11)
}
  0x47   : > { %s2065_s19 = smov 128   ;;  %s2066_s24 = smov 8  }
  0x48   : > { %1818 = dma.hbm_to_vmem [thread:$0]  (!%p2183_p12), %s2460_s4, 384, %s2187_s29, [#allocation3], %s2065_s19, %s2065_s19, %s2066_s24  }
  0x49   : > { %s1962_s11 = scalar_lea.hbm %s2462_s6, 16 }
  0x4a   : > { %p1963_p13 = scmp.ne.s32.totalorder %s2462_s6, %s1962_s11  ;;  %p1969_p5 = scmp.lt.u32.totalorder %s1962_s11, %s2462_s6 }
  0x4c   : > { %p1965_p1 = pnand %p1963_p13, %p2199_p0 }
  0x4e   : > { %p1966_p6 = pneg %p1965_p1 }
  0x50   : > { %p1971_p9 = pnand %p1969_p5, %p1966_p6 }
  0x52   : > { %1974 = shalt.err (!%p1971_p9)
}
  0x53   : > { %s1975_s20 = scalar_lea.vmem %s318_s12, 16  ;;  %s1982_s29 = scalar_lea.vmem %s318_s12, 32 }
  0x54   : > { %p1976_p10 = scmp.ne.s32.totalorder %s318_s12, %s1975_s20  ;;  %p1983_p4 = scmp.lt.s32.totalorder %s318_s12, %s318_s12 }
  0x55   : > { %p1984_p7 = scmp.lt.s32.totalorder %s1982_s29, %s1975_s20 }
  0x56   : > { %p1978_p2 = pnand %p1976_p10, %p2199_p0 }
  0x57   : > { %p1985_p8 = por %p1984_p7, %p1983_p4 }
  0x58   : > { %p1979_p3 = pneg %p1978_p2 }
  0x5a   : > { %p1986_p11 = pnand %p1985_p8, %p1979_p3 }
  0x5c   : > { %1989 = shalt.err (!%p1986_p11)
}
  0x5d   : > { %1824 = dma.hbm_to_vmem [thread:$0]  (!%p2183_p12), %s2462_s6, 16, %s318_s12, [#allocation6]  }
  0x5e   : > { %p2485_p13 = scmp.ne.s32.totalorder %s2481_s25, 0 }
  0x5f   : > { %p2486_p1 = scmp.eq.s32.totalorder (!%p2485_p13), %s2147_s17, 0 }
  0x60   : > { %347 = sbr.rel (%p2485_p13) target bundleno = 1520 (0x5f0), region = 60 }
  0x67   : > { %2035 = dma.done.wait (%p2486_p1), [#allocation3], 384   ;;  %p2487_p0 = pmov %p2486_p1 }
  0x69   : > { %2037 = vsyncadd (%p2487_p0), [#allocation3], 4294966912  ;;  %p2488_p6 = pmov %p2487_p0 }
  0x6a   : > { %p2489_p5 = pmov %p2487_p0 }
  0x6b   : > { %2039 = dma.done.wait (%p2488_p6), [#allocation6], 32  }
  0x6c   : > { %2041 = vsyncadd (%p2489_p5), [#allocation6], 4294967264  ;;  %p393_p9 = scmp.lt.s32.totalorder %s2147_s17, 1  ;;  %v402_v0 = vlaneseq  ;;  %vm426_vm0 = vcmask 64512   ;;  %v423_v2 = vld [vmem:[%s2457_s1] sm:$0xff]  ;;  %v1664_v7 = vld [vmem:[%s2457_s1 + $0x10] sm:$0xff] }
  0x6d   : > { %1731 = vmatprep.subr.mxu0 %v423_v2  ;;  %v1659_v8 = vld [vmem:[%s2457_s1 + $0x8] sm:$0xff]  ;;  %v800_v30 = vld [vmem:[#allocation2 + $0x8] sm:$0xff]  ;;  %v1667_v59 = vld [vmem:[%s2458_s2] ss:$0 sm:$0xff]  ;;  %vm1048_vm7 = vcmask 130048   ;;  %vm1426_vm10 = vcmask 261120  }
  0x6e   : > { %s394_s5 = scalar_select %p393_p9, %s2147_s17, 1  ;;  %v2269_v1 = vshrl.u32 %v402_v0, 7  ;;  %1732 = vmatpush3.msra.mxu0 %v423_v2  ;;  %1726 = vmatprep.subr.mxu1 %v1659_v8  ;;  %v2312_v31 = vld [vmem:[#allocation2] sm:$0xff]  ;;  %v1668_v62 = vld [vmem:[%s2459_s3] ss:$0 sm:$0xff] }
  0x6f   : > { %1736 = vmatprep.subr.mxu0 %v1664_v7  ;;  %1727 = vmatpush3.msra.mxu1 %v1659_v8  ;;  %s390_s24 = sand.u32 1, %s2052_s14   ;;  %p2490_p10 = scmp.ne.s32.totalorder %s2478_s23, 0 }
  0x70   : > { %s1694_s25 = sshll.u32 %s394_s5, 4  ;;  %vm405_vm1 = vcmp.ge.s32.totalorder %v2269_v1, 1  ;;  %vm409_vm2 = vcmp.lt.s32.totalorder %v2269_v1, 1  ;;  %vm418_vm3 = vcmp.lt.s32.totalorder %v2269_v1, 7  ;;  %v2297_v15 = vadd.s32 8, %v2269_v1  ;;  %1741 = vmatprep.subr.mxu1 %v800_v30  ;;  %s1656_s5 = sshll.u32 %s390_s24, 4 }
  0x71   : > { %s397_s28 = scalar_lea.vmem %s2456_s0, %s1694_s25  ;;  %s1695_s25 = sshll.u32 %s2147_s17, 8 }
  0x72   : > { %v398_v3 = vld [vmem:[%s397_s28] sm:$0xff]  ;;  %v399_v4 = vld [vmem:[%s397_s28 + $0x8] sm:$0xff]  ;;  %vm415_vm4 = vcmp.le.s32.totalorder %v2297_v15, 14  ;;  %s392_s30 = scalar_lea.vmem [#allocation8], %s1656_s5  ;;  %s2407_s15 = scalar_lea.hbm %s2466_s10, %s1695_s25 }
  0x73   : > { %v407_v5 = vrot.slane %v398_v3, 7  ;;  %v408_v6 = vrot.slane %v399_v4, 7  ;;  %1728 = vmatprep.mubr.msk.f32.mxu1 %vm426_vm0, %v398_v3  ;;  %v416_v9 = vrot.slane %v398_v3, 1  ;;  %v417_v10 = vrot.slane %v399_v4, 1  ;;  %s1553_s12 = sshll.u32 %s392_s30, 4  ;;  %s2415_s17 = scalar_lea.sflag [#allocation4], %s390_s24  ;;  %s2409_s12 = int_to_ptr.vmem [resolvable:$true] %s1553_s12 }
  0x74   : > { %1729 = vmatmul.mubr.msk.f32.vlgmr.msra.gmra.mrb[0].mxu1 %vm426_vm0, %v399_v4  ;;  %s1990_s21 = scalar_lea.vmem %s2409_s12, 256  ;;  %s2068_s11 = smov [#allocation8]  }
  0x75   : > { %v411_v11 = vsel %vm409_vm2, %v408_v6, %v407_v5  ;;  %v410_v12 = vsel %vm409_vm2, %v407_v5, %v408_v6  ;;  %v419_v14 = vsel %vm418_vm3, %v416_v9, %v417_v10  ;;  %v420_v16 = vsel %vm418_vm3, %v417_v10, %v416_v9  ;;  %1742 = vmatpush3.msra.mxu1 %v800_v30  ;;  %p1991_p12 = scmp.ne.s32.totalorder %s2409_s12, %s1990_s21  ;;  %s1994_s18 = sshll.u32 %s2068_s11, 4  ;;  %s1995_s18 = int_to_ptr.vmem [resolvable:$false] %s1994_s18 }
  0x76   : > { %v412_v13 = vsel %vm405_vm1, %v411_v11, 0.0  ;;  %v422_v17 = vsel %vm415_vm4, %v420_v16, 0.0  ;;  %1746 = vmatprep.subr.mxu1 %v2312_v31  ;;  %s1996_s22 = scalar_lea.vmem %s1995_s18, 512  ;;  %p1997_p4 = scmp.lt.s32.totalorder %s2409_s12, %s1995_s18 }
  0x77   : > { %1733 = vmatprep.mubr.msk.f32.mxu0 %vm426_vm0, %v412_v13  ;;  %p1992_p2 = pnand %p1991_p12, %p2490_p10  ;;  %p1998_p7 = scmp.lt.s32.totalorder %s1996_s22, %s1990_s21 }
  0x78   : > { %1734 = vmatmul.mubr.msk.f32.vlgmr.msra.gmra.mrb[0].mxu0 %vm426_vm0, %v410_v12 }
  0x79   : > { %1737 = vmatpush3.msra.mxu0 %v1664_v7  ;;  %1738 = vmatprep.mubr.msk.f32.mxu0 %vm426_vm0, %v419_v14  ;;  %p1993_p3 = pneg %p1992_p2  ;;  %p1999_p8 = por %p1998_p7, %p1997_p4 }
  0x7b   : > { %p2000_p11 = pnand %p1999_p8, %p1993_p3 }
  0x80   : > { %1739 = vmatmul.mubr.msk.f32.vlgmr.msra.gmra.mrb[0].mxu0 %vm426_vm0, %v422_v17 }
 0x147   : > { %v1730_v18 = vpop.f32.mrb[0].mxu1 }
 0x148   : > { %v499_v19 = vpop.f32.mrb[1].mxu1 }
 0x153   : > { %v1740_v20 = vpop.f32.mrb[0].mxu0 }
 0x154   : > { %v1789_v21 = vadd.f32 %v1740_v20, %v1730_v18  ;;  %v663_v22 = vpop.f32.mrb[1].mxu0 }
 0x155   : > { %v1790_v23 = vadd.f32 %v663_v22, %v499_v19 }
 0x156   : > { %v688_v27 = vmul.f32 %v1789_v21, %v1789_v21  ;;  %v677_v28 = vsel %vm426_vm0, %v1789_v21, 0.0 }
 0x157   : > { %v674_v24 = vsel %vm426_vm0, %v1790_v23, 0.0  ;;  %v687_v25 = vmul.f32 %v1790_v23, %v1790_v23 }
 0x158   : > { %675 = vadd.xlane.f32.xlu0 %v674_v24  ;;  %v692_v29 = vsel %vm426_vm0, %v688_v27, 0.0 }
 0x159   : > { %v689_v26 = vsel %vm426_vm0, %v687_v25, 0.0 }
 0x15a   : > { %690 = vadd.xlane.f32.xlu1 %v689_v26 }
 0x15c   : > { %678 = vadd.xlane.f32.xlu0 %v677_v28 }
 0x15e   : > { %693 = vadd.xlane.f32.xlu1 %v692_v29 }
 0x1e5   : > { %v676_v32 = vpop.xlane.xlu0 %675 }
 0x1e7   : > { %v691_v33 = vpop.xlane.xlu1 %690 }
 0x1e9   : > { %v679_v34 = vpop.xlane.xlu0 %678 }
 0x1ea   : > { %v680_v35 = vadd.f32 %v679_v34, %v676_v32 }
 0x1eb   : > { %v694_v36 = vpop.xlane.xlu1 %693 }
 0x1ec   : > { %v681_v37 = vrot.slane %v680_v35, 4  ;;  %v695_v38 = vadd.f32 %v694_v36, %v691_v33 }
 0x1ee   : > { %v682_v39 = vadd.f32 %v681_v37, %v680_v35  ;;  %v696_v40 = vrot.slane %v695_v38, 4 }
 0x1f0   : > { %v683_v41 = vrot.slane %v682_v39, 2  ;;  %v697_v42 = vadd.f32 %v696_v40, %v695_v38 }
 0x1f2   : > { %v684_v43 = vadd.f32 %v683_v41, %v682_v39  ;;  %v698_v44 = vrot.slane %v697_v42, 2 }
 0x1f4   : > { %v685_v45 = vrot.slane %v684_v43, 1  ;;  %v699_v46 = vadd.f32 %v698_v44, %v697_v42 }
 0x1f6   : > { %v686_v47 = vadd.f32 %v685_v45, %v684_v43  ;;  %v700_v48 = vrot.slane %v699_v46, 1  ;;  %v2067_v45 = vmov -1.0  }
 0x1f8   : > { %v703_v49 = vmul.f32 0.0078125, %v686_v47  ;;  %v701_v50 = vadd.f32 %v700_v48, %v699_v46 }
 0x1fa   : > { %v704_v51 = vmul.f32 0.0078125, %v701_v50  ;;  %v705_v52 = vmul.f32 %v703_v49, %v703_v49  ;;  %v708_v56 = vsub.f32 %v1790_v23, %v703_v49  ;;  %v709_v57 = vsub.f32 %v1789_v21, %v703_v49 }
 0x1fc   : > { %v706_v53 = vsub.f32 %v704_v51, %v705_v52 }
 0x1fe   : > { %v707_v54 = vmax.f32 %v706_v53, 0.0 }
 0x200   : > { %v710_v55 = vadd.f32 1e-05, %v707_v54 }
 0x202   : > { %1876 = vrsqrt.f32 %v710_v55 }
 0x20c   : > { %v1877_v58 = vpop.eup %1876 }
 0x20d   : > { %v712_v60 = vmul.f32 %v1877_v58, %v708_v56  ;;  %v713_v61 = vmul.f32 %v1877_v58, %v709_v57  ;;  %v964_v58 = vld [vmem:[#allocation2 + $0x10] sm:$0xff] }
 0x20f   : > { %v720_v63 = vmul.f32 %v1667_v59, %v712_v60  ;;  %v721_v0 = vmul.f32 %v1667_v59, %v713_v61 }
 0x211   : > { %v728_v2 = vadd.f32 %v1668_v62, %v720_v63  ;;  %v729_v3 = vadd.f32 %v1668_v62, %v721_v0 }
 0x213   : > { %v732_v4 = vmul.f32 0.70710677, %v728_v2  ;;  %v733_v5 = vmul.f32 0.70710677, %v729_v3  ;;  %v730_v51 = vmul.f32 0.5, %v728_v2  ;;  %v731_v53 = vmul.f32 0.5, %v729_v3 }
 0x215   : > { %v738_v6 = vand.u32 2147483647, %v732_v4  ;;  %v739_v7 = vand.u32 2147483647, %v733_v5  ;;  %vm734_vm5 = vcmp.ge.f32.partialorder %v732_v4, 0.0  ;;  %vm735_vm6 = vcmp.ge.f32.partialorder %v733_v5, 0.0 }
 0x216   : > { %v736_v46 = vsel %vm734_vm5, 1.0, %v2067_v45  ;;  %v737_v49 = vsel %vm735_vm6, 1.0, %v2067_v45 }
 0x217   : > { %v740_v8 = vmul.f32 0.3275911, %v738_v6  ;;  %v741_v9 = vmul.f32 0.3275911, %v739_v7  ;;  %v766_v12 = vsub.f32 0.0, %v738_v6  ;;  %v767_v13 = vsub.f32 0.0, %v739_v7 }
 0x219   : > { %v742_v10 = vadd.f32 1.0, %v740_v8  ;;  %v743_v11 = vadd.f32 1.0, %v741_v9  ;;  %v768_v16 = vmul.f32 %v766_v12, %v738_v6  ;;  %v769_v19 = vmul.f32 %v767_v13, %v739_v7  ;;  %v1677_v12 = vld [vmem:[%s2463_s7 + $0x10] sm:$0xff]  ;;  %v1678_v13 = vld [vmem:[%s2463_s7 + $0x18] sm:$0xff] }
 0x21b   : > { %1878 = vrcp.f32 %v742_v10  ;;  %v770_v22 = vmul.f32 1.442695, %v768_v16  ;;  %v772_v25 = vmul.f32 1.442695, %v769_v19  ;;  %v1173_v16 = vld [vmem:[%s2463_s7] sm:$0xff] }
 0x21c   : > { %1880 = vrcp.f32 %v743_v11 }
 0x21d   : > { %1882 = vpow2.f32 %v770_v22 }
 0x21e   : > { %1884 = vpow2.f32 %v772_v25 }
 0x225   : > { %v1879_v14 = vpop.eup %1878 }
 0x226   : > { %v1881_v17 = vpop.eup %1880  ;;  %v748_v18 = vmul.f32 1.0614054, %v1879_v14 }
 0x227   : > { %v749_v20 = vmul.f32 1.0614054, %v1881_v17  ;;  %v1883_v39 = vpop.eup %1882 }
 0x228   : > { %v750_v21 = vadd.f32 -1.4531521, %v748_v18  ;;  %v1885_v41 = vpop.eup %1884 }
 0x229   : > { %v751_v23 = vadd.f32 -1.4531521, %v749_v20 }
 0x22a   : > { %v752_v24 = vmul.f32 %v1879_v14, %v750_v21 }
 0x22b   : > { %v753_v26 = vmul.f32 %v1881_v17, %v751_v23 }
 0x22c   : > { %v754_v27 = vadd.f32 1.4214138, %v752_v24 }
 0x22d   : > { %v755_v28 = vadd.f32 1.4214138, %v753_v26 }
 0x22e   : > { %v756_v29 = vmul.f32 %v1879_v14, %v754_v27 }
 0x22f   : > { %v757_v30 = vmul.f32 %v1881_v17, %v755_v28 }
 0x230   : > { %v758_v32 = vadd.f32 -0.28449672, %v756_v29 }
 0x231   : > { %v759_v33 = vadd.f32 -0.28449672, %v757_v30 }
 0x232   : > { %v760_v34 = vmul.f32 %v1879_v14, %v758_v32 }
 0x233   : > { %v761_v35 = vmul.f32 %v1881_v17, %v759_v33 }
 0x234   : > { %v762_v36 = vadd.f32 0.2548296, %v760_v34 }
 0x235   : > { %v763_v37 = vadd.f32 0.2548296, %v761_v35 }
 0x236   : > { %v764_v38 = vmul.f32 %v1879_v14, %v762_v36  ;;  %v1777_v14 = vpack.c.bf16 %v1678_v13, %v1677_v12 }
 0x237   : > { %v765_v40 = vmul.f32 %v1881_v17, %v763_v37  ;;  %v1174_v17 = vld [vmem:[%s2463_s7 + $0x8] sm:$0xff] }
 0x238   : > { %v774_v42 = vmul.f32 %v1883_v39, %v764_v38  ;;  %1778 = vmatprep.subr.bf16.mxu0 %v1777_v14  ;;  %v2358_v18 = vpack.c.bf16 %v1174_v17, %v1173_v16 }
 0x239   : > { %v775_v43 = vmul.f32 %v1885_v41, %v765_v40  ;;  %1780 = vmatpush3.bf16.msra.mxu0 %v1777_v14 }
 0x23a   : > { %v776_v44 = vsub.f32 1.0, %v774_v42  ;;  %1782 = vmatprep.subr.bf16.mxu0 %v2358_v18 }
 0x23b   : > { %v777_v47 = vsub.f32 1.0, %v775_v43 }
 0x23c   : > { %v778_v48 = vmul.f32 %v776_v44, %v736_v46 }
 0x23d   : > { %v779_v50 = vmul.f32 %v777_v47, %v737_v49 }
 0x23e   : > { %v780_v52 = vadd.f32 1.0, %v778_v48  ;;  %v1675_v48 = vld [vmem:[#allocation5] ss:$0 sm:$0xff] }
 0x23f   : > { %v781_v54 = vadd.f32 1.0, %v779_v50 }
 0x240   : > { %v782_v55 = vmul.f32 %v780_v52, %v730_v51  ;;  %v1676_v51 = vld [vmem:[#allocation7] ss:$0 sm:$0xff] }
 0x241   : > { %v783_v56 = vmul.f32 %v781_v54, %v731_v53 }
 0x242   : > { %1743 = vmatprep.mubr.msk.f32.mxu1 %vm426_vm0, %v782_v55  ;;  %v786_v57 = vrot.slane %v782_v55, 7  ;;  %v792_v62 = vrot.slane %v782_v55, 1 }
 0x243   : > { %1744 = vmatmul.mubr.msk.f32.vlgmr.msra.gmra.mrb[2].mxu1 %vm426_vm0, %v783_v56  ;;  %v787_v59 = vrot.slane %v783_v56, 7  ;;  %v793_v63 = vrot.slane %v783_v56, 1 }
 0x244   : > { %1747 = vmatpush3.msra.mxu1 %v2312_v31 }
 0x245   : > { %v789_v60 = vsel %vm409_vm2, %v787_v59, %v786_v57  ;;  %1751 = vmatprep.subr.mxu1 %v964_v58  ;;  %v788_v0 = vsel %vm409_vm2, %v786_v57, %v787_v59  ;;  %v794_v2 = vsel %vm418_vm3, %v792_v62, %v793_v63  ;;  %v795_v31 = vsel %vm418_vm3, %v793_v63, %v792_v62 }
 0x246   : > { %v790_v61 = vsel %vm405_vm1, %v789_v60, 0.0  ;;  %v797_v3 = vsel %vm415_vm4, %v795_v31, 0.0 }
 0x247   : > { %1748 = vmatprep.mubr.msk.f32.mxu1 %vm426_vm0, %v790_v61 }
 0x24b   : > { %1749 = vmatmul.mubr.msk.f32.vlgmr.msra.gmra.mrb[2].mxu1 %vm426_vm0, %v788_v0 }
 0x24c   : > { %1752 = vmatpush3.msra.mxu1 %v964_v58  ;;  %1753 = vmatprep.mubr.msk.f32.mxu1 %vm426_vm0, %v794_v2 }
 0x253   : > { %1754 = vmatmul.mubr.msk.f32.vlgmr.msra.gmra.mrb[2].mxu1 %vm426_vm0, %v797_v3 }
 0x326   : > { %v1755_v4 = vpop.f32.mrb[2].mxu1 }
 0x327   : > { %v1037_v5 = vpop.f32.mrb[3].mxu1  ;;  %v1052_v6 = vsel %vm1048_vm7, %v1755_v4, 0.0  ;;  %v1063_v7 = vmul.f32 %v1755_v4, %v1755_v4 }
 0x328   : > { %v1062_v8 = vmul.f32 %v1037_v5, %v1037_v5  ;;  %1053 = vadd.xlane.f32.xlu1 %v1052_v6  ;;  %v1049_v9 = vsel %vm1048_vm7, %v1037_v5, 0.0 }
 0x329   : > { %1050 = vadd.xlane.f32.xlu0 %v1049_v9  ;;  %v1067_v10 = vsel %vm1048_vm7, %v1063_v7, 0.0 }
 0x32a   : > { %v1064_v11 = vsel %vm1048_vm7, %v1062_v8, 0.0 }
 0x32c   : > { %1068 = vadd.xlane.f32.xlu1 %v1067_v10 }
 0x32d   : > { %1065 = vadd.xlane.f32.xlu0 %v1064_v11 }
 0x3b5   : > { %v1054_v19 = vpop.xlane.xlu1 %1053 }
 0x3b6   : > { %v1051_v20 = vpop.xlane.xlu0 %1050 }
 0x3b7   : > { %v1055_v21 = vadd.f32 %v1054_v19, %v1051_v20 }
 0x3b9   : > { %v1056_v22 = vrot.slane %v1055_v21, 4  ;;  %v1069_v23 = vpop.xlane.xlu1 %1068 }
 0x3ba   : > { %v1066_v24 = vpop.xlane.xlu0 %1065 }
 0x3bb   : > { %v1057_v25 = vadd.f32 %v1056_v22, %v1055_v21  ;;  %v1070_v26 = vadd.f32 %v1069_v23, %v1066_v24 }
 0x3bd   : > { %v1058_v27 = vrot.slane %v1057_v25, 2  ;;  %v1071_v28 = vrot.slane %v1070_v26, 4 }
 0x3bf   : > { %v1059_v29 = vadd.f32 %v1058_v27, %v1057_v25  ;;  %v1072_v30 = vadd.f32 %v1071_v28, %v1070_v26 }
 0x3c1   : > { %v1060_v32 = vrot.slane %v1059_v29, 1  ;;  %v1073_v33 = vrot.slane %v1072_v30, 2 }
 0x3c3   : > { %v1061_v34 = vadd.f32 %v1060_v32, %v1059_v29  ;;  %v1074_v35 = vadd.f32 %v1073_v33, %v1072_v30 }
 0x3c5   : > { %v1078_v36 = vmul.f32 0.00390625, %v1061_v34  ;;  %v1075_v37 = vrot.slane %v1074_v35, 1 }
 0x3c7   : > { %v1076_v38 = vadd.f32 %v1075_v37, %v1074_v35  ;;  %v1080_v39 = vmul.f32 %v1078_v36, %v1078_v36  ;;  %v1083_v44 = vsub.f32 %v1037_v5, %v1078_v36  ;;  %v1084_v46 = vsub.f32 %v1755_v4, %v1078_v36 }
 0x3c9   : > { %v1079_v40 = vmul.f32 0.00390625, %v1076_v38 }
 0x3cb   : > { %v1081_v41 = vsub.f32 %v1079_v40, %v1080_v39 }
 0x3cd   : > { %v1082_v42 = vmax.f32 %v1081_v41, 0.0  ;;  %v1683_v41 = vld [vmem:[%s2463_s7 + $0x20] sm:$0xff] }
 0x3cf   : > { %v1085_v43 = vadd.f32 1e-05, %v1082_v42  ;;  %v1684_v42 = vld [vmem:[%s2463_s7 + $0x28] sm:$0xff] }
 0x3d1   : > { %1886 = vrsqrt.f32 %v1085_v43 }
 0x3db   : > { %v1887_v47 = vpop.eup %1886 }
 0x3dc   : > { %v1087_v49 = vmul.f32 %v1887_v47, %v1083_v44  ;;  %v1088_v50 = vmul.f32 %v1887_v47, %v1084_v46 }
 0x3de   : > { %v1095_v52 = vmul.f32 %v1675_v48, %v1087_v49  ;;  %v1096_v53 = vmul.f32 %v1675_v48, %v1088_v50  ;;  %v1785_v48 = vpack.c.bf16 %v1684_v42, %v1683_v41 }
 0x3e0   : > { %v1103_v54 = vadd.f32 %v1676_v51, %v1095_v52  ;;  %v1104_v55 = vadd.f32 %v1676_v51, %v1096_v53 }
 0x3e2   : > { %v1107_v56 = vmul.f32 0.70710677, %v1103_v54  ;;  %v1108_v57 = vmul.f32 0.70710677, %v1104_v55  ;;  %v1105_v39 = vmul.f32 0.5, %v1103_v54  ;;  %v1106_v43 = vmul.f32 0.5, %v1104_v55 }
 0x3e4   : > { %v1113_v58 = vand.u32 2147483647, %v1107_v56  ;;  %v1114_v59 = vand.u32 2147483647, %v1108_v57  ;;  %vm1109_vm8 = vcmp.ge.f32.partialorder %v1107_v56, 0.0  ;;  %vm1110_vm9 = vcmp.ge.f32.partialorder %v1108_v57, 0.0 }
 0x3e5   : > { %v1111_v34 = vsel %vm1109_vm8, 1.0, %v2067_v45  ;;  %v1112_v37 = vsel %vm1110_vm9, 1.0, %v2067_v45 }
 0x3e6   : > { %v1115_v60 = vmul.f32 0.3275911, %v1113_v58  ;;  %v1116_v61 = vmul.f32 0.3275911, %v1114_v59  ;;  %v1141_v0 = vsub.f32 0.0, %v1113_v58  ;;  %v1142_v2 = vsub.f32 0.0, %v1114_v59 }
 0x3e8   : > { %v1117_v62 = vadd.f32 1.0, %v1115_v60  ;;  %v1118_v63 = vadd.f32 1.0, %v1116_v61  ;;  %v1143_v3 = vmul.f32 %v1141_v0, %v1113_v58  ;;  %v1144_v6 = vmul.f32 %v1142_v2, %v1114_v59 }
 0x3ea   : > { %1888 = vrcp.f32 %v1117_v62  ;;  %v1145_v9 = vmul.f32 1.442695, %v1143_v3  ;;  %v1147_v12 = vmul.f32 1.442695, %v1144_v6 }
 0x3eb   : > { %1890 = vrcp.f32 %v1118_v63 }
 0x3ec   : > { %1892 = vpow2.f32 %v1145_v9 }
 0x3ed   : > { %1894 = vpow2.f32 %v1147_v12 }
 0x3f4   : > { %v1889_v31 = vpop.eup %1888 }
 0x3f5   : > { %v1891_v4 = vpop.eup %1890  ;;  %v1123_v5 = vmul.f32 1.0614054, %v1889_v31 }
 0x3f6   : > { %v1124_v7 = vmul.f32 1.0614054, %v1891_v4  ;;  %v1893_v27 = vpop.eup %1892 }
 0x3f7   : > { %v1125_v8 = vadd.f32 -1.4531521, %v1123_v5  ;;  %v1895_v29 = vpop.eup %1894 }
 0x3f8   : > { %v1126_v10 = vadd.f32 -1.4531521, %v1124_v7 }
 0x3f9   : > { %v1127_v11 = vmul.f32 %v1889_v31, %v1125_v8 }
 0x3fa   : > { %v1128_v13 = vmul.f32 %v1891_v4, %v1126_v10 }
 0x3fb   : > { %v1129_v14 = vadd.f32 1.4214138, %v1127_v11 }
 0x3fc   : > { %v1130_v16 = vadd.f32 1.4214138, %v1128_v13 }
 0x3fd   : > { %v1131_v17 = vmul.f32 %v1889_v31, %v1129_v14 }
 0x3fe   : > { %v1132_v19 = vmul.f32 %v1891_v4, %v1130_v16 }
 0x3ff   : > { %v1133_v20 = vadd.f32 -0.28449672, %v1131_v17 }
 0x400   : > { %v1134_v21 = vadd.f32 -0.28449672, %v1132_v19 }
 0x401   : > { %v1135_v22 = vmul.f32 %v1889_v31, %v1133_v20 }
 0x402   : > { %v1136_v23 = vmul.f32 %v1891_v4, %v1134_v21 }
 0x403   : > { %v1137_v24 = vadd.f32 0.2548296, %v1135_v22 }
 0x404   : > { %v1138_v25 = vadd.f32 0.2548296, %v1136_v23 }
 0x405   : > { %v1139_v26 = vmul.f32 %v1889_v31, %v1137_v24 }
 0x406   : > { %v1140_v28 = vmul.f32 %v1891_v4, %v1138_v25 }
 0x407   : > { %v1149_v30 = vmul.f32 %v1893_v27, %v1139_v26 }
 0x408   : > { %v1150_v32 = vmul.f32 %v1895_v29, %v1140_v28  ;;  %v1687_v29 = vld [vmem:[%s2464_s8] ss:$0 sm:$0xff] }
 0x409   : > { %v1151_v33 = vsub.f32 1.0, %v1149_v30 }
 0x40a   : > { %v1152_v35 = vsub.f32 1.0, %v1150_v32 }
 0x40b   : > { %v1153_v36 = vmul.f32 %v1151_v33, %v1111_v34  ;;  %v1688_v33 = vld [vmem:[%s2465_s9] ss:$0 sm:$0xff] }
 0x40c   : > { %v1154_v38 = vmul.f32 %v1152_v35, %v1112_v37 }
 0x40d   : > { %v1155_v40 = vadd.f32 1.0, %v1153_v36 }
 0x40e   : > { %v1156_v44 = vadd.f32 1.0, %v1154_v38 }
 0x40f   : > { %v1157_v46 = vmul.f32 %v1155_v40, %v1105_v39 }
 0x410   : > { %v1158_v47 = vmul.f32 %v1156_v44, %v1106_v43 }
 0x411   : > { %1760 = vmatprep.mubr.msk.f32.mxu0 %vm1048_vm7, %v1157_v46  ;;  %v1161_v49 = vrot.slane %v1157_v46, 7  ;;  %v1167_v50 = vrot.slane %v1157_v46, 1 }
 0x412   : > { %1761 = vmatmul.mubr.msk.f32.vlgmr.msra.gmra.mrb[2].mxu0 %vm1048_vm7, %v1158_v47  ;;  %v1162_v51 = vrot.slane %v1158_v47, 7  ;;  %v1168_v52 = vrot.slane %v1158_v47, 1 }
 0x413   : > { %1784 = vmatpush3.bf16.msra.mxu0 %v2358_v18 }
 0x414   : > { %v1164_v53 = vsel %vm409_vm2, %v1162_v51, %v1161_v49  ;;  %1786 = vmatprep.subr.bf16.mxu0 %v1785_v48  ;;  %v1163_v54 = vsel %vm409_vm2, %v1161_v49, %v1162_v51  ;;  %v1169_v55 = vsel %vm418_vm3, %v1167_v50, %v1168_v52  ;;  %v1170_v56 = vsel %vm418_vm3, %v1168_v52, %v1167_v50 }
 0x415   : > { %v1165_v57 = vsel %vm405_vm1, %v1164_v53, 0.0  ;;  %v1172_v18 = vsel %vm415_vm4, %v1170_v56, 0.0 }
 0x416   : > { %1767 = vmatprep.mubr.msk.f32.mxu0 %vm1048_vm7, %v1165_v57 }
 0x41a   : > { %1768 = vmatmul.mubr.msk.f32.vlgmr.msra.gmra.mrb[2].mxu0 %vm1048_vm7, %v1163_v54 }
 0x41b   : > { %1788 = vmatpush3.bf16.msra.mxu0 %v1785_v48  ;;  %1774 = vmatprep.mubr.msk.f32.mxu0 %vm1048_vm7, %v1169_v55 }
 0x422   : > { %1775 = vmatmul.mubr.msk.f32.vlgmr.msra.gmra.mrb[2].mxu0 %vm1048_vm7, %v1172_v18 }
 0x4f5   : > { %v1776_v58 = vpop.f32.mrb[2].mxu0 }
 0x4f6   : > { %v1415_v59 = vpop.f32.mrb[3].mxu0  ;;  %v1430_v60 = vsel %vm1426_vm10, %v1776_v58, 0.0  ;;  %v1441_v61 = vmul.f32 %v1776_v58, %v1776_v58 }
 0x4f7   : > { %v1440_v1 = vmul.f32 %v1415_v59, %v1415_v59  ;;  %1431 = vadd.xlane.f32.xlu1 %v1430_v60  ;;  %v1427_v62 = vsel %vm1426_vm10, %v1415_v59, 0.0 }
 0x4f8   : > { %1428 = vadd.xlane.f32.xlu0 %v1427_v62  ;;  %v1445_v63 = vsel %vm1426_vm10, %v1441_v61, 0.0 }
 0x4f9   : > { %v1442_v0 = vsel %vm1426_vm10, %v1440_v1, 0.0 }
 0x4fb   : > { %1446 = vadd.xlane.f32.xlu1 %v1445_v63 }
 0x4fc   : > { %1443 = vadd.xlane.f32.xlu0 %v1442_v0 }
 0x584   : > { %v1432_v15 = vpop.xlane.xlu1 %1431 }
 0x585   : > { %v1429_v2 = vpop.xlane.xlu0 %1428 }
 0x586   : > { %v1433_v31 = vadd.f32 %v1432_v15, %v1429_v2 }
 0x588   : > { %v1434_v3 = vrot.slane %v1433_v31, 4  ;;  %v1447_v4 = vpop.xlane.xlu1 %1446 }
 0x589   : > { %v1444_v5 = vpop.xlane.xlu0 %1443 }
 0x58a   : > { %v1435_v6 = vadd.f32 %v1434_v3, %v1433_v31  ;;  %v1448_v7 = vadd.f32 %v1447_v4, %v1444_v5 }
 0x58c   : > { %v1436_v8 = vrot.slane %v1435_v6, 2  ;;  %v1449_v9 = vrot.slane %v1448_v7, 4 }
 0x58e   : > { %v1437_v10 = vadd.f32 %v1436_v8, %v1435_v6  ;;  %v1450_v11 = vadd.f32 %v1449_v9, %v1448_v7 }
 0x590   : > { %v1438_v12 = vrot.slane %v1437_v10, 1  ;;  %v1451_v13 = vrot.slane %v1450_v11, 2 }
 0x592   : > { %v1439_v14 = vadd.f32 %v1438_v12, %v1437_v10  ;;  %v1452_v16 = vadd.f32 %v1451_v13, %v1450_v11 }
 0x594   : > { %v1456_v17 = vmul.f32 0.001953125, %v1439_v14  ;;  %v1453_v19 = vrot.slane %v1452_v16, 1 }
 0x596   : > { %v1454_v20 = vadd.f32 %v1453_v19, %v1452_v16  ;;  %v1458_v21 = vmul.f32 %v1456_v17, %v1456_v17  ;;  %v1461_v26 = vsub.f32 %v1415_v59, %v1456_v17  ;;  %v1462_v27 = vsub.f32 %v1776_v58, %v1456_v17 }
 0x598   : > { %v1457_v22 = vmul.f32 0.001953125, %v1454_v20 }
 0x59a   : > { %v1459_v23 = vsub.f32 %v1457_v22, %v1458_v21 }
 0x59c   : > { %v1460_v24 = vmax.f32 %v1459_v23, 0.0 }
 0x59e   : > { %v1463_v25 = vadd.f32 1e-05, %v1460_v24 }
 0x5a0   : > { %1896 = vrsqrt.f32 %v1463_v25 }
 0x5aa   : > { %v1897_v28 = vpop.eup %1896 }
 0x5ab   : > { %v1465_v30 = vmul.f32 %v1897_v28, %v1461_v26  ;;  %v1466_v32 = vmul.f32 %v1897_v28, %v1462_v27 }
 0x5ad   : > { %v1473_v34 = vmul.f32 %v1687_v29, %v1465_v30  ;;  %v1474_v35 = vmul.f32 %v1687_v29, %v1466_v32 }
 0x5af   : > { %v1481_v36 = vadd.f32 %v1688_v33, %v1473_v34  ;;  %v1482_v37 = vadd.f32 %v1688_v33, %v1474_v35 }
 0x5b1   : > { %v1485_v38 = vmul.f32 0.70710677, %v1481_v36  ;;  %v1486_v39 = vmul.f32 0.70710677, %v1482_v37  ;;  %v1483_v17 = vmul.f32 0.5, %v1481_v36  ;;  %v1484_v20 = vmul.f32 0.5, %v1482_v37 }
 0x5b3   : > { %v1491_v40 = vand.u32 2147483647, %v1485_v38  ;;  %v1492_v41 = vand.u32 2147483647, %v1486_v39  ;;  %vm1487_vm11 = vcmp.ge.f32.partialorder %v1485_v38, 0.0  ;;  %vm1488_vm12 = vcmp.ge.f32.partialorder %v1486_v39, 0.0 }
 0x5b4   : > { %v1489_v11 = vsel %vm1487_vm11, 1.0, %v2067_v45  ;;  %v1490_v13 = vsel %vm1488_vm12, 1.0, %v2067_v45 }
 0x5b5   : > { %v1493_v42 = vmul.f32 0.3275911, %v1491_v40  ;;  %v1494_v43 = vmul.f32 0.3275911, %v1492_v41  ;;  %v1519_v47 = vsub.f32 0.0, %v1491_v40  ;;  %v1520_v48 = vsub.f32 0.0, %v1492_v41 }
 0x5b7   : > { %v1495_v44 = vadd.f32 1.0, %v1493_v42  ;;  %v1496_v46 = vadd.f32 1.0, %v1494_v43  ;;  %v1521_v50 = vmul.f32 %v1519_v47, %v1491_v40  ;;  %v1522_v52 = vmul.f32 %v1520_v48, %v1492_v41 }
 0x5b9   : > { %1898 = vrcp.f32 %v1495_v44  ;;  %v1523_v56 = vmul.f32 1.442695, %v1521_v50  ;;  %v1525_v18 = vmul.f32 1.442695, %v1522_v52 }
 0x5ba   : > { %1900 = vrcp.f32 %v1496_v46 }
 0x5bb   : > { %1902 = vpow2.f32 %v1523_v56 }
 0x5bc   : > { %1904 = vpow2.f32 %v1525_v18 }
 0x5c3   : > { %v1899_v49 = vpop.eup %1898 }
 0x5c4   : > { %v1901_v51 = vpop.eup %1900  ;;  %v1501_v53 = vmul.f32 1.0614054, %v1899_v49 }
 0x5c5   : > { %v1502_v54 = vmul.f32 1.0614054, %v1901_v51  ;;  %v1903_v5 = vpop.eup %1902 }
 0x5c6   : > { %v1503_v55 = vadd.f32 -1.4531521, %v1501_v53  ;;  %v1905_v7 = vpop.eup %1904 }
 0x5c7   : > { %v1504_v57 = vadd.f32 -1.4531521, %v1502_v54 }
 0x5c8   : > { %v1505_v58 = vmul.f32 %v1899_v49, %v1503_v55 }
 0x5c9   : > { %v1506_v59 = vmul.f32 %v1901_v51, %v1504_v57 }
 0x5ca   : > { %v1507_v60 = vadd.f32 1.4214138, %v1505_v58 }
 0x5cb   : > { %v1508_v61 = vadd.f32 1.4214138, %v1506_v59 }
 0x5cc   : > { %v1509_v1 = vmul.f32 %v1899_v49, %v1507_v60 }
 0x5cd   : > { %v1510_v62 = vmul.f32 %v1901_v51, %v1508_v61 }
 0x5ce   : > { %v1511_v63 = vadd.f32 -0.28449672, %v1509_v1 }
 0x5cf   : > { %v1512_v0 = vadd.f32 -0.28449672, %v1510_v62 }
 0x5d0   : > { %v1513_v15 = vmul.f32 %v1899_v49, %v1511_v63 }
 0x5d1   : > { %v1514_v2 = vmul.f32 %v1901_v51, %v1512_v0 }
 0x5d2   : > { %v1515_v31 = vadd.f32 0.2548296, %v1513_v15 }
 0x5d3   : > { %v1516_v3 = vadd.f32 0.2548296, %v1514_v2 }
 0x5d4   : > { %v1517_v4 = vmul.f32 %v1899_v49, %v1515_v31 }
 0x5d5   : > { %v1518_v6 = vmul.f32 %v1901_v51, %v1516_v3 }
 0x5d6   : > { %v1527_v8 = vmul.f32 %v1903_v5, %v1517_v4 }
 0x5d7   : > { %v1528_v9 = vmul.f32 %v1905_v7, %v1518_v6 }
 0x5d8   : > { %v1529_v10 = vsub.f32 1.0, %v1527_v8 }
 0x5d9   : > { %v1530_v12 = vsub.f32 1.0, %v1528_v9 }
 0x5da   : > { %v1531_v14 = vmul.f32 %v1529_v10, %v1489_v11 }
 0x5db   : > { %v1532_v16 = vmul.f32 %v1530_v12, %v1490_v13 }
 0x5dc   : > { %v1533_v19 = vadd.f32 1.0, %v1531_v14 }
 0x5dd   : > { %v1534_v21 = vadd.f32 1.0, %v1532_v16 }
 0x5de   : > { %v1535_v22 = vmul.f32 %v1533_v19, %v1483_v17 }
 0x5df   : > { %v1536_v45 = vmul.f32 %v1534_v21, %v1484_v20 }
 0x5e0   : > { %1537 = vst.msk [vmem:[%s392_s30] sm:$0xff] %vm1426_vm10, %v1535_v22 }
 0x5e1   : > { %1538 = vst.msk [vmem:[%s392_s30 + $0x8] sm:$0xff] %vm1426_vm10, %v1536_v45 }
 0x5e2   : > { %2003 = shalt.err (!%p2000_p11)
}
 0x5e3   : > { %s2004_s27 = scalar_lea.hbm %s2407_s15, 256  ;;  %s2008_s19 = scalar_lea.hbm %s2466_s10, 512 }
 0x5e4   : > { %p2005_p13 = scmp.ne.s32.totalorder %s2407_s15, %s2004_s27  ;;  %p2009_p6 = scmp.lt.u32.totalorder %s2407_s15, %s2466_s10 }
 0x5e5   : > { %p2010_p5 = scmp.lt.u32.totalorder %s2008_s19, %s2004_s27  ;;  %p2012_p12 = scmp.lt.u32.totalorder %s2004_s27, %s2407_s15 }
 0x5e6   : > { %p2006_p1 = pnand %p2005_p13, %p2490_p10 }
 0x5e7   : > { %p2011_p9 = por %p2010_p5, %p2009_p6 }
 0x5e8   : > { %p2007_p0 = pneg %p2006_p1 }
 0x5e9   : > { %p2013_p2 = por %p2012_p12, %p2011_p9 }
 0x5eb   : > { %p2014_p3 = pnand %p2013_p2, %p2007_p0 }
 0x5ed   : > { %2017 = shalt.err (!%p2014_p3)
}
 0x5ee   : > { %s2069_s25 = smov 128   ;;  %s2070_s30 = smov 8  }
 0x5ef   : > { %1813 = dma.vmem_to_hbm [thread:$0]  (%p2490_p10), %s2409_s12, 256, %s2407_s15, %s2415_s17, %s2069_s25, %s2069_s25, %s2070_s30  }
 0x5f0 PF: > { %s2491_s28 = sld [smem:[#allocation15_spill]]  ;;  %p1835_p4 = scmp.ge.s32.totalorder %s2060_s16, 2 }
 0x5f1   : > { %s1568_s26 = sand.u32 1, %s2048_s13  }
 0x5f2   : > { %s1569_s21 = scalar_lea.sflag [#allocation4], %s1568_s26 }
 0x5f6   : > { %p2492_p7 = scmp.ne.s32.totalorder %s2491_s28, 0 }
 0x5f8   : > { %p1826_p8 = pnand %p1835_p4, %p2492_p7 }
 0x5fa   : > { %2043 = dma.done.wait (!%p1826_p8), %s1569_s21, 256  }
 0x5fb   : > { %2045 = vsyncadd (!%p1826_p8), %s1569_s21, 4294967040  ;;  %s2493_s16 = sld [smem:[#allocation13_spill]]  ;;  %s2494_s11 = sld [smem:[#allocation12_spill]] }
 0x5fc   : > { %s2495_s15 = sld [smem:[#allocation14_spill]]  ;;  %s2496_s13 = smov %s2052_s14 }
 0x601   : > { %p22_p11 = scmp.ge.s32.totalorder %s2493_s16, 4   ;;  %s2497_s14 = smov %s2494_s11 }
 0x603   :  { %24 = sbr.rel (!%p22_p11) target bundleno = 7 (0x7), region = 114 }
 0x60a   :  { %1574 = vsyncpa [#allocation3], 1 }
 0x60b   :  { %1576 = vsyncpa [#allocation3 + $0x1], 1 }
 0x60c   :  { %1577 = vsyncpa [#allocation6], 1 }
 0x60d   :  { %1578 = vsyncpa [#allocation4], 1 }
 0x60e   :  { %1580 = vsyncpa [#allocation4 + $0x1], 1 }

</bundles_post_ra>
